<compile_context>
chip_gen: v5e
topology: v5e:2x2
jax: 0.10.0
libtpu: 0.0.40
codegen_flags: <defaults>
</compile_context>

<pallas_src>
import jax
import jax.numpy as jnp
from jax.experimental import pallas as pl
from jax.experimental.pallas import tpu as pltpu


def conv_bn_kernel(w_ref, x_ref, gamma_ref, beta_ref, o_ref):
    # w_ref:     (TCout, Cin)  bf16 (pre-cast, static parameter)
    # x_ref:     (Cin, M)      f32, M = N*H*W, resident across all grid steps
    # gamma_ref: (TCout, 1)    f32
    # beta_ref:  (TCout, 1)    f32
    # o_ref:     (TCout, M)
    #
    # 1x1 conv == matmul on this Cout tile; bf16 MXU inputs, f32 accumulation.
    y = jnp.dot(
        w_ref[...],
        x_ref[...].astype(jnp.bfloat16),
        preferred_element_type=jnp.float32,
    )  # (TCout, M), f32

    # Stage the matmul result in the output block instead of a separate
    # full-size temp (output is f32 by default, so this is lossless); then
    # read it back once for both reduction sums.
    if o_ref.dtype == jnp.float32:
        o_ref[...] = y
        y = o_ref[...]

    m = y.shape[1]
    inv_m = 1.0 / m

    # Single-pass per-channel batch statistics (biased variance, like PyTorch
    # BatchNorm2d in training mode): E[y], E[y^2] over the M axis.
    s1 = jnp.sum(y, axis=1, keepdims=True)       # (TCout, 1)
    s2 = jnp.sum(y * y, axis=1, keepdims=True)   # (TCout, 1)
    mean = s1 * inv_m
    var = s2 * inv_m - mean * mean

    inv_std = jax.lax.rsqrt(var + 1e-5)

    # Fold normalization + affine into one fused multiply-add over the tile:
    #   out = (y - mean) * inv_std * gamma + beta  ==  y * a + b
    a = gamma_ref[...] * inv_std                 # (TCout, 1)
    b = beta_ref[...] - mean * a                 # (TCout, 1)

    o_ref[...] = (y * a + b).astype(o_ref.dtype)


def _pick_cout_tile(cout):
    """Largest 'nice' Cout tile (multiple of 8) that divides Cout, keeping the
    grid small (3-4 steps for Cout=480); falls back to a single full tile."""
    for t in (120, 160, 96, 128, 80, 64, 48, 40, 32, 16, 8):
        if cout >= t and cout % t == 0:
            return t
    return cout


def conv2d_1x1_batchnorm(x_nchw, w_oi_bf16, gamma, beta, *, out_dtype=jnp.float32):
    """x_nchw: (N, Cin, H, W) f32, w_oi_bf16: (Cout, Cin) bf16, gamma/beta: (Cout,) f32."""
    N, Cin, H, W = x_nchw.shape
    Cout = w_oi_bf16.shape[0]
    M = N * H * W

    if N == 1:
        # NCHW with N == 1 is contiguous as (Cin, H*W): zero-copy reshape.
        x_mat = x_nchw.reshape(Cin, M)
    else:
        # General-N fallback (BN stats must still span all N*H*W positions).
        x_mat = jnp.transpose(x_nchw, (1, 0, 2, 3)).reshape(Cin, M)

    gamma2 = gamma.reshape(Cout, 1)
    beta2 = beta.reshape(Cout, 1)

    t_cout = _pick_cout_tile(Cout)
    grid = (Cout // t_cout,)

    out_itemsize = jnp.dtype(out_dtype).itemsize
    flops = 2 * M * Cin * Cout
    bytes_accessed = (
        2 * Cin * Cout            # bf16 weight
        + 4 * M * Cin             # f32 input (read once, resident across tiles)
        + out_itemsize * M * Cout # output
        + 4 * 2 * Cout            # gamma, beta
    )

    out_mat = pl.pallas_call(
        conv_bn_kernel,
        out_shape=jax.ShapeDtypeStruct((Cout, M), out_dtype),
        grid=grid,
        in_specs=[
            pl.BlockSpec((t_cout, Cin), lambda i: (i, 0)),  # w tile
            pl.BlockSpec((Cin, M), lambda i: (0, 0)),       # x: constant index -> resident
            pl.BlockSpec((t_cout, 1), lambda i: (i, 0)),    # gamma tile
            pl.BlockSpec((t_cout, 1), lambda i: (i, 0)),    # beta tile
        ],
        out_specs=pl.BlockSpec((t_cout, M), lambda i: (i, 0)),
        compiler_params=pltpu.CompilerParams(
            dimension_semantics=("parallel",),  # independent Cout tiles; v7x megacore split
        ),
        cost_estimate=pl.CostEstimate(
            flops=flops, transcendentals=0, bytes_accessed=bytes_accessed
        ),
    )(w_oi_bf16, x_mat, gamma2, beta2)

    if N == 1:
        # (Cout, M) -> (1, Cout, H, W): zero-copy reshape.
        out = out_mat.reshape(1, Cout, H, W)
    else:
        out = out_mat.reshape(Cout, N, H, W).transpose(1, 0, 2, 3)

    # TODO(synk): PyTorch BatchNorm2d (training) also updates running_mean/var
    # (with unbiased variance); those side-effect buffers are not produced here
    # (the returned tensor matches the module's forward output).
    return out


if __name__ == "__main__":
    key = jax.random.PRNGKey(0)
    k_x, k_w, k_g, k_b = jax.random.split(key, 4)

    # Shapes implied by the module: input (1, 80, 28, 28), 1x1 conv 80 -> 480.
    N, Cin, H, W = 1, 80, 28, 28
    Cout = 480

    x = jax.random.normal(k_x, (N, Cin, H, W), dtype=jnp.float32)
    # Conv2d weight (Cout, Cin, 1, 1), no bias -> (Cout, Cin); pre-cast once to
    # bf16 (static network parameter) instead of per-call inside the kernel.
    w = jax.random.normal(k_w, (Cout, Cin), dtype=jnp.float32) * 0.05
    w_bf16 = w.astype(jnp.bfloat16)
    # BatchNorm affine params (small deterministic perturbation around defaults).
    gamma = 1.0 + 0.1 * jax.random.normal(k_g, (Cout,), dtype=jnp.float32)
    beta = 0.1 * jax.random.normal(k_b, (Cout,), dtype=jnp.float32)

    out = conv2d_1x1_batchnorm(x, w_bf16, gamma, beta)
    jax.block_until_ready(out)
    assert out.shape == (N, Cout, H, W)
    print("KERNEL_OK")
</pallas_src>

<mosaic_0001>
module attributes {stable_mosaic.version = 11 : i64} {
  func.func @conv_bn_kernel(%arg0: i32, %arg1: memref<120x80xbf16, #tpu.memory_space<vmem>>, %arg2: memref<80x784xf32, #tpu.memory_space<vmem>>, %arg3: memref<120x1xf32, #tpu.memory_space<vmem>>, %arg4: memref<120x1xf32, #tpu.memory_space<vmem>>, %arg5: memref<120x784xf32, #tpu.memory_space<vmem>>) attributes {dimension_semantics = [#tpu.dimension_semantics<parallel>], iteration_bounds = array<i64: 4>, scalar_prefetch = 0 : i64, scratch_operands = 0 : i64, tpu.core_type = #tpu.core_type<tc>, window_params = [{transform_indices = @transform_0, window_bounds = array<i64: 120, 80>}, {pipeline_mode = #tpu.pipeline_mode<synchronous>, transform_indices = @transform_1, window_bounds = array<i64: 80, 784>}, {transform_indices = @transform_2, window_bounds = array<i64: 120, 1>}, {transform_indices = @transform_3, window_bounds = array<i64: 120, 1>}, {transform_indices = @transform_4, window_bounds = array<i64: 120, 784>}]} {
    %c0 = arith.constant 0 : index
    %c0_0 = arith.constant 0 : index
    %0 = vector.load %arg1[%c0, %c0_0] : memref<120x80xbf16, #tpu.memory_space<vmem>>, vector<120x80xbf16>
    %c0_1 = arith.constant 0 : index
    %c0_2 = arith.constant 0 : index
    %1 = vector.load %arg2[%c0_1, %c0_2] : memref<80x784xf32, #tpu.memory_space<vmem>>, vector<80x784xf32>
    %2 = arith.truncf %1 : vector<80x784xf32> to vector<80x784xbf16>
    %cst = arith.constant dense<0.000000e+00> : vector<120x784xf32>
    %3 = tpu.matmul %0, %2, %cst {dimension_numbers = #tpu.dot_dimension_numbers<[1], [0], [0], [1], [0, 0, 1, 1], [], []>} : vector<120x80xbf16>, vector<80x784xbf16>, vector<120x784xf32> -> vector<120x784xf32>
    %c0_3 = arith.constant 0 : index
    %c0_4 = arith.constant 0 : index
    %4 = vector.load %arg5[%c0_3, %c0_4] : memref<120x784xf32, #tpu.memory_space<vmem>>, vector<120x784xf32>
    tpu.vector_store %arg5[%c0_3, %c0_4], %3 {strides = array<i32>} : memref<120x784xf32, #tpu.memory_space<vmem>>, vector<120x784xf32>,
    %c0_5 = arith.constant 0 : index
    %c0_6 = arith.constant 0 : index
    %5 = vector.load %arg5[%c0_5, %c0_6] : memref<120x784xf32, #tpu.memory_space<vmem>>, vector<120x784xf32>
    %cst_7 = arith.constant dense<0.000000e+00> : vector<120xf32>
    %6 = vector.multi_reduction <add>, %5, %cst_7 [1] : vector<120x784xf32> to vector<120xf32>
    %7 = vector.shape_cast %6 : vector<120xf32> to vector<120x1xf32>
    %8 = arith.mulf %5, %5 : vector<120x784xf32>
    %cst_8 = arith.constant dense<0.000000e+00> : vector<120xf32>
    %9 = vector.multi_reduction <add>, %8, %cst_8 [1] : vector<120x784xf32> to vector<120xf32>
    %10 = vector.shape_cast %9 : vector<120xf32> to vector<120x1xf32>
    %cst_9 = arith.constant 0.00127551018 : f32
    %11 = vector.broadcast %cst_9 : f32 to vector<120x1xf32>
    %12 = arith.mulf %7, %11 : vector<120x1xf32>
    %cst_10 = arith.constant 0.00127551018 : f32
    %13 = vector.broadcast %cst_10 : f32 to vector<120x1xf32>
    %14 = arith.mulf %10, %13 : vector<120x1xf32>
    %15 = arith.mulf %12, %12 : vector<120x1xf32>
    %16 = arith.subf %14, %15 : vector<120x1xf32>
    %cst_11 = arith.constant 9.99999974E-6 : f32
    %17 = vector.broadcast %cst_11 : f32 to vector<120x1xf32>
    %18 = arith.addf %16, %17 : vector<120x1xf32>
    %19 = math.rsqrt %18 : vector<120x1xf32>
    %c0_12 = arith.constant 0 : index
    %c0_13 = arith.constant 0 : index
    %20 = vector.load %arg3[%c0_12, %c0_13] : memref<120x1xf32, #tpu.memory_space<vmem>>, vector<120x1xf32>
    %21 = arith.mulf %20, %19 : vector<120x1xf32>
    %c0_14 = arith.constant 0 : index
    %c0_15 = arith.constant 0 : index
    %22 = vector.load %arg4[%c0_14, %c0_15] : memref<120x1xf32, #tpu.memory_space<vmem>>, vector<120x1xf32>
    %23 = arith.mulf %12, %21 : vector<120x1xf32>
    %24 = arith.subf %22, %23 : vector<120x1xf32>
    %25 = vector.broadcast %21 : vector<120x1xf32> to vector<120x784xf32>
    %26 = arith.mulf %5, %25 : vector<120x784xf32>
    %27 = vector.broadcast %24 : vector<120x1xf32> to vector<120x784xf32>
    %28 = arith.addf %26, %27 : vector<120x784xf32>
    %c0_16 = arith.constant 0 : index
    %c0_17 = arith.constant 0 : index
    %29 = vector.load %arg5[%c0_16, %c0_17] : memref<120x784xf32, #tpu.memory_space<vmem>>, vector<120x784xf32>
    tpu.vector_store %arg5[%c0_16, %c0_17], %28 {strides = array<i32>} : memref<120x784xf32, #tpu.memory_space<vmem>>, vector<120x784xf32>,
    return
  }
  func.func @transform_0(%arg0: i32) -> (i32, i32) {
    %c0_i32 = arith.constant 0 : i32
    %c0_i32_0 = arith.constant 0 : i32
    return %arg0, %c0_i32 : i32, i32
  }
  func.func @transform_1(%arg0: i32) -> (i32, i32) {
    %c0_i32 = arith.constant 0 : i32
    %c0_i32_0 = arith.constant 0 : i32
    %c0_i32_1 = arith.constant 0 : i32
    return %c0_i32, %c0_i32_0 : i32, i32
  }
  func.func @transform_2(%arg0: i32) -> (i32, i32) {
    %c0_i32 = arith.constant 0 : i32
    %c0_i32_0 = arith.constant 0 : i32
    return %arg0, %c0_i32 : i32, i32
  }
  func.func @transform_3(%arg0: i32) -> (i32, i32) {
    %c0_i32 = arith.constant 0 : i32
    %c0_i32_0 = arith.constant 0 : i32
    return %arg0, %c0_i32 : i32, i32
  }
  func.func @transform_4(%arg0: i32) -> (i32, i32) {
    %c0_i32 = arith.constant 0 : i32
    %c0_i32_0 = arith.constant 0 : i32
    return %arg0, %c0_i32 : i32, i32
  }
}

</mosaic_0001>

<bundles_post_ra>
// kernel: tpu_custom_call.1
= control target key start
LH: loop header
LB: loop body
LE: loop exit
PB: predicated region body
PF: predicated region fallthrough
CT: control target
= control target key end

     0   :  { %9 = vsyncpa [#allocation3], 0  ;;  %s2496_s15 = smov 0   ;;  %s3541_s0 = inlined_call_operand.vmem [shape: bf16[480,80], index: 0, kind: input, shape index: {}]   ;;  %s3542_s1 = inlined_call_operand.hbm [shape: f32[80,784], index: 1, kind: input, shape index: {}]   ;;  %s3543_s2 = inlined_call_operand.vmem [shape: f32[480,1], index: 2, kind: input, shape index: {}]   ;;  %s3544_s3 = inlined_call_operand.vmem [shape: f32[480,1], index: 3, kind: input, shape index: {}]   ;;  %s3545_s4 = inlined_call_operand.vmem [shape: f32[480,784], index: 4, kind: output, shape index: {}]  }
   0x1 LB: > { %s156_s18 = sshll.u32 %s3542_s1, 4  ;;  %s2229_s19 = sadd.s32 4294967295, %s2465_s15   ;;  %s2465_s15 = sphi %s2496_s15, %s15_s15   ;;  %s157_s18 = int_to_ptr.hbm [resolvable:$true] %s156_s18 }
   0x2   : > { %p2231_p0 = scmp.ge.s32.totalorder %s2465_s15, 1  ;;  %p145_p1 = scmp.lt.s32.totalorder %s2465_s15, 5 }
   0x3   : > { %p2357_p2 = scmp.eq.s32.totalorder %s2229_s19, 0  ;;  %s2467_s20 = smov [#allocation2]  }
   0x4   : > { %p146_p3 = pnand %p2231_p0, %p145_p1  ;;  %s158_s21 = sshll.u32 %s2467_s20, 4  ;;  %s159_s21 = int_to_ptr.vmem [resolvable:$true] %s158_s21 }
   0x5   : > { %s2468_s22 = smov 896   ;;  %s2469_s23 = smov 56  }
   0x6   : > { %p2353_p4 = pneg %p146_p3  ;;  %201 = sbr.rel (%p146_p3) target bundleno = 660 (0x294), region = 36 }
   0x8   : > { %p2354_p5 = pnand %p2357_p2, %p2353_p4 }
   0xa   : > { %2356 = dma.hbm_to_vmem [thread:$0]  (!%p2354_p5), %s157_s18, 8960, %s159_s21, [#allocation3], %s2468_s22, %s2468_s22, %s2469_s23  }
   0xb   : > { %2460 = dma.done.wait (%p2357_p2), [#allocation3], 8960  }
   0xc   : > { %2462 = vsyncadd (%p2357_p2), [#allocation3], 4294958336  ;;  %s2507_s24 = smul.u32 15, %s2229_s19  ;;  %v336_v0 = vld [vmem:[#allocation2 + $0x1c0] sm:$0xff]  ;;  %v343_v1 = vld [vmem:[#allocation2 + $0x1f8] sm:$0xff]  ;;  %vm423_vm0 = vcmask 654336  }
   0xd   : > { %v338_v2 = vld [vmem:[#allocation2 + $0x1d0] sm:$0xff]  ;;  %v378_v3 = vpack.c.bf16 %v343_v1, %v336_v0  ;;  %v345_v4 = vld [vmem:[#allocation2 + $0x208] sm:$0xff]  ;;  %v344_v6 = vld [vmem:[#allocation2 + $0x200] sm:$0xff]  ;;  %vm790_vm1 = vcmask 130048  }
   0xe   : > { %v337_v5 = vld [vmem:[#allocation2 + $0x1c8] sm:$0xff]  ;;  %v2509_v7 = vpack.c.bf16 %v345_v4, %v338_v2  ;;  %v322_v9 = vld [vmem:[#allocation2 + $0x150] sm:$0xff]  ;;  %v324_v11 = vld [vmem:[#allocation2 + $0x160] sm:$0xff]  ;;  %p240_p6 = scmp.lt.s32.totalorder %s2507_s24, 59 }
   0xf   : > { %v2511_v8 = vpack.c.bf16 %v344_v6, %v337_v5  ;;  %v329_v10 = vld [vmem:[#allocation2 + $0x188] sm:$0xff]  ;;  %451 = vmatpush.bf16.msra.mxu0 %v378_v3  ;;  %2333 = vmatpush.bf16.msra.mxu3 %v378_v3  ;;  %v331_v13 = vld [vmem:[#allocation2 + $0x198] sm:$0xff]  ;;  %v330_v15 = vld [vmem:[#allocation2 + $0x190] sm:$0xff] }
  0x10   : > { %v371_v12 = vpack.c.bf16 %v329_v10, %v322_v9  ;;  %v323_v14 = vld [vmem:[#allocation2 + $0x158] sm:$0xff]  ;;  %2343 = vmatpush.bf16.msra.mxu2 %v2509_v7  ;;  %v2516_v16 = vpack.c.bf16 %v331_v13, %v324_v11  ;;  %v308_v18 = vld [vmem:[#allocation2 + $0xe0] sm:$0xff]  ;;  %v310_v20 = vld [vmem:[#allocation2 + $0xf0] sm:$0xff]  ;;  %s3694_s24 = smov (!%p240_p6, %s2507_s24), 59 }
  0x11   : > { %2338 = vmatpush.bf16.msra.mxu1 %v2511_v8  ;;  %v2518_v17 = vpack.c.bf16 %v330_v15, %v323_v14  ;;  %v315_v19 = vld [vmem:[#allocation2 + $0x118] sm:$0xff]  ;;  %v317_v21 = vld [vmem:[#allocation2 + $0x128] sm:$0xff]  ;;  %v316_v23 = vld [vmem:[#allocation2 + $0x120] sm:$0xff]  ;;  %s2236_s25 = sshll.u32 %s3694_s24, 2  ;;  %s2348_s29 = smul.u32 56, %s3694_s24 }
  0x12   : > { %v309_v22 = vld [vmem:[#allocation2 + $0xe8] sm:$0xff]  ;;  %v364_v24 = vpack.c.bf16 %v315_v19, %v308_v18  ;;  %v2527_v25 = vpack.c.bf16 %v317_v21, %v310_v20  ;;  %v294_v27 = vld [vmem:[#allocation2 + $0x70] sm:$0xff]  ;;  %v296_v29 = vld [vmem:[#allocation2 + $0x80] sm:$0xff]  ;;  %s2539_s28 = scalar_lea.vmem %s3541_s0, %s2236_s25  ;;  %s2237_s7 = sshll.u32 %s3694_s24, 3 }
  0x13   : > { %452 = vmatpush.bf16.msra.mxu0 %v371_v12  ;;  %2334 = vmatpush.bf16.msra.mxu3 %v371_v12  ;;  %v2529_v26 = vpack.c.bf16 %v316_v23, %v309_v22  ;;  %v301_v28 = vld [vmem:[#allocation2 + $0xa8] sm:$0xff]  ;;  %v303_v30 = vld [vmem:[#allocation2 + $0xb8] sm:$0xff]  ;;  %v302_v32 = vld [vmem:[#allocation2 + $0xb0] sm:$0xff]  ;;  %s2755_s6 = scalar_lea.vmem %s3545_s4, %s2348_s29  ;;  %s3214_s10 = scalar_lea.vmem %s3543_s2, %s2237_s7 }
  0x14   : > { %2344 = vmatpush.bf16.msra.mxu2 %v2516_v16  ;;  %v295_v31 = vld [vmem:[#allocation2 + $0x78] sm:$0xff]  ;;  %v357_v33 = vpack.c.bf16 %v301_v28, %v294_v27  ;;  %v280_v34 = vld [vmem:[#allocation2] sm:$0xff]  ;;  %v2534_v35 = vpack.c.bf16 %v303_v30, %v296_v29  ;;  %v282_v38 = vld [vmem:[#allocation2 + $0x10] sm:$0xff]  ;;  %s3224_s13 = scalar_lea.vmem %s3544_s3, %s2237_s7 }
  0x15   : > { %2339 = vmatpush.bf16.msra.mxu1 %v2518_v17  ;;  %v358_v36 = vpack.c.bf16 %v302_v32, %v295_v31  ;;  %v287_v37 = vld [vmem:[#allocation2 + $0x38] sm:$0xff]  ;;  %v289_v39 = vld [vmem:[#allocation2 + $0x48] sm:$0xff]  ;;  %v288_v41 = vld [vmem:[#allocation2 + $0x40] sm:$0xff] }
  0x16   : > { %v281_v40 = vld [vmem:[#allocation2 + $0x8] sm:$0xff]  ;;  %v339_v42 = vld [vmem:[#allocation2 + $0x1d8] sm:$0xff]  ;;  %v346_v43 = vld [vmem:[#allocation2 + $0x210] sm:$0xff]  ;;  %v350_v46 = vpack.c.bf16 %v287_v37, %v280_v34  ;;  %v2542_v47 = vpack.c.bf16 %v289_v39, %v282_v38 }
  0x17   : > { %453 = vmatpush.bf16.msra.mxu0 %v364_v24  ;;  %2335 = vmatpush.bf16.msra.mxu3 %v364_v24  ;;  %v342_v44 = vld [vmem:[#allocation2 + $0x1f0] sm:$0xff]  ;;  %v349_v45 = vld [vmem:[#allocation2 + $0x228] sm:$0xff]  ;;  %v351_v48 = vpack.c.bf16 %v288_v41, %v281_v40  ;;  %v2545_v49 = vld [vmem:[%s2539_s28] sm:$0xff]  ;;  %v381_v51 = vpack.c.bf16 %v346_v43, %v339_v42 }
  0x18   : > { %2345 = vmatpush.bf16.msra.mxu2 %v2527_v25  ;;  %v2548_v50 = vld [vmem:[%s2539_s28 + $0x10] sm:$0xff]  ;;  %v384_v52 = vpack.c.bf16 %v349_v45, %v342_v44  ;;  %v341_v53 = vld [vmem:[#allocation2 + $0x1e8] sm:$0xff]  ;;  %v348_v54 = vld [vmem:[#allocation2 + $0x220] sm:$0xff] }
  0x19   : > { %2340 = vmatpush.bf16.msra.mxu1 %v2529_v26  ;;  %v325_v55 = vld [vmem:[#allocation2 + $0x168] sm:$0xff]  ;;  %v332_v56 = vld [vmem:[#allocation2 + $0x1a0] sm:$0xff]  ;;  %v335_v58 = vld [vmem:[#allocation2 + $0x1b8] sm:$0xff]  ;;  %v383_v59 = vpack.c.bf16 %v348_v54, %v341_v53 }
  0x1a   : > { %v328_v57 = vld [vmem:[#allocation2 + $0x180] sm:$0xff]  ;;  %v374_v60 = vpack.c.bf16 %v332_v56, %v325_v55  ;;  %v327_v62 = vld [vmem:[#allocation2 + $0x178] sm:$0xff]  ;;  %v334_v63 = vld [vmem:[#allocation2 + $0x1b0] sm:$0xff] }
  0x1b   : > { %454 = vmatpush.bf16.msra.mxu0 %v357_v33  ;;  %2336 = vmatpush.bf16.msra.mxu3 %v357_v33  ;;  %v377_v61 = vpack.c.bf16 %v335_v58, %v328_v57  ;;  %v311_v0 = vld [vmem:[#allocation2 + $0xf8] sm:$0xff]  ;;  %v318_v1 = vld [vmem:[#allocation2 + $0x130] sm:$0xff]  ;;  %v376_v3 = vpack.c.bf16 %v334_v63, %v327_v62  ;;  %v321_v4 = vld [vmem:[#allocation2 + $0x148] sm:$0xff] }
  0x1c   : > { %2346 = vmatpush.bf16.msra.mxu2 %v2534_v35  ;;  %v314_v2 = vld [vmem:[#allocation2 + $0x110] sm:$0xff]  ;;  %v367_v5 = vpack.c.bf16 %v318_v1, %v311_v0  ;;  %v2563_v9 = vld [vmem:[%s2539_s28 + $0x8] sm:$0xff]  ;;  %v2566_v10 = vld [vmem:[%s2539_s28 + $0x18] sm:$0xff] }
  0x1d   : > { %2341 = vmatpush.bf16.msra.mxu1 %v358_v36  ;;  %v370_v6 = vpack.c.bf16 %v321_v4, %v314_v2  ;;  %v320_v11 = vld [vmem:[#allocation2 + $0x140] sm:$0xff]  ;;  %v297_v12 = vld [vmem:[#allocation2 + $0x88] sm:$0xff]  ;;  %v347_v23 = vld [vmem:[#allocation2 + $0x218] sm:$0xff] }
  0x1e   : > { %v304_v14 = vld [vmem:[#allocation2 + $0xc0] sm:$0xff]  ;;  %v283_v24 = vld [vmem:[#allocation2 + $0x18] sm:$0xff]  ;;  %v326_v28 = vld [vmem:[#allocation2 + $0x170] sm:$0xff] }
  0x1f   : > { %455 = vmatpush.bf16.msra.mxu0 %v350_v46  ;;  %2337 = vmatpush.bf16.msra.mxu3 %v350_v46  ;;  %v300_v15 = vld [vmem:[#allocation2 + $0xa0] sm:$0xff]  ;;  %v360_v18 = vpack.c.bf16 %v304_v14, %v297_v12  ;;  %v333_v29 = vld [vmem:[#allocation2 + $0x1a8] sm:$0xff]  ;;  %v286_v32 = vld [vmem:[#allocation2 + $0x30] sm:$0xff] }
  0x20   : > { %2347 = vmatpush.bf16.msra.mxu2 %v2542_v47  ;;  %v2580_v20 = vld [vmem:[%s2539_s28 + $0x20] sm:$0xff]  ;;  %v375_v30 = vpack.c.bf16 %v333_v29, %v326_v28  ;;  %v2593_v31 = vld [vmem:[%s2539_s28 + $0x28] sm:$0xff]  ;;  %v298_v41 = vld [vmem:[#allocation2 + $0x90] sm:$0xff] }
  0x21   : > { %2342 = vmatpush.bf16.msra.mxu1 %v351_v48  ;;  %v340_v21 = vld [vmem:[#allocation2 + $0x1e0] sm:$0xff]  ;;  %v293_v33 = vld [vmem:[#allocation2 + $0x68] sm:$0xff]  ;;  %v291_v45 = vld [vmem:[#allocation2 + $0x58] sm:$0xff] }
  0x22   : > { %2268 = vmatmul.msk.bf16.vlgmr.msra.gmra.mxu0 %vm423_vm0, %v2545_v49  ;;  %2270 = vmatmul.msk.bf16.vlgmr.msra.gmra.mxu3 %vm423_vm0, %v2548_v50  ;;  %v312_v34 = vld [vmem:[#allocation2 + $0x100] sm:$0xff]  ;;  %v285_v37 = vld [vmem:[#allocation2 + $0x28] sm:$0xff] }
  0x23   : > { %595 = vmatpush.bf16.msrb.mxu3 %v381_v51  ;;  %2286 = vmatmul.msk.bf16.vlgmr.msra.gmra.mxu2 %vm423_vm0, %v2548_v50  ;;  %v292_v38 = vld [vmem:[#allocation2 + $0x60] sm:$0xff]  ;;  %v305_v42 = vld [vmem:[#allocation2 + $0xc8] sm:$0xff] }
  0x24   : > { %739 = vmatpush.bf16.msrb.mxu2 %v384_v52  ;;  %2278 = vmatmul.msk.bf16.vlgmr.msra.gmra.mxu1 %vm423_vm0, %v2548_v50  ;;  %v355_v40 = vpack.c.bf16 %v292_v38, %v285_v37  ;;  %v361_v43 = vpack.c.bf16 %v305_v42, %v298_v41  ;;  %v284_v44 = vld [vmem:[#allocation2 + $0x20] sm:$0xff] }
  0x25   : > { %499 = vmatpush.bf16.msrb.mxu0 %v2511_v8  ;;  %691 = vmatpush.bf16.msrb.mxu1 %v383_v59  ;;  %v313_v8 = vld [vmem:[#allocation2 + $0x108] sm:$0xff]  ;;  %v354_v46 = vpack.c.bf16 %v291_v45, %v284_v44 }
  0x26   : > { %v369_v13 = vpack.c.bf16 %v320_v11, %v313_v8 }
  0x27   : > { %596 = vmatpush.bf16.msrb.mxu3 %v374_v60 }
  0x28   : > { %740 = vmatpush.bf16.msrb.mxu2 %v377_v61 }
  0x29   : > { %500 = vmatpush.bf16.msrb.mxu0 %v2518_v17  ;;  %692 = vmatpush.bf16.msrb.mxu1 %v376_v3  ;;  %v307_v17 = vld [vmem:[#allocation2 + $0xd8] sm:$0xff] }
  0x2a   : > { %v363_v19 = vpack.c.bf16 %v307_v17, %v300_v15 }
  0x2b   : > { %597 = vmatpush.bf16.msrb.mxu3 %v367_v5 }
  0x2c   : > { %741 = vmatpush.bf16.msrb.mxu2 %v370_v6 }
  0x2d   : > { %501 = vmatpush.bf16.msrb.mxu0 %v2529_v26  ;;  %693 = vmatpush.bf16.msrb.mxu1 %v369_v13  ;;  %v382_v26 = vpack.c.bf16 %v347_v23, %v340_v21 }
  0x2f   : > { %598 = vmatpush.bf16.msrb.mxu3 %v360_v18 }
  0x30   : > { %742 = vmatpush.bf16.msrb.mxu2 %v363_v19 }
  0x31   : > { %502 = vmatpush.bf16.msrb.mxu0 %v358_v36  ;;  %v319_v36 = vld [vmem:[#allocation2 + $0x138] sm:$0xff] }
  0x32   : > { %2269 = vmatmul.msk.bf16.gmra.mxu0 %vm423_vm0, %v2563_v9  ;;  %2271 = vmatmul.msk.bf16.gmra.mxu3 %vm423_vm0, %v2566_v10  ;;  %v368_v39 = vpack.c.bf16 %v319_v36, %v312_v34 }
  0x33   : > { %2287 = vmatmul.msk.bf16.gmra.mxu2 %vm423_vm0, %v2566_v10 }
  0x34   : > { %2279 = vmatmul.msk.bf16.gmra.mxu1 %vm423_vm0, %v2566_v10 }
  0x35   : > { %503 = vmatpush.bf16.msrb.mxu0 %v351_v48  ;;  %v279_v48 = vld [vmem:[%s2539_s28 + $0x38] sm:$0xf] }
  0x36   : > { %v414_v51 = vunpack.c.l.b16 %v279_v48 }
  0x38   : > { %v2615_v52 = vpack.c.b16 %v414_v51, %v414_v51 }
  0x39   : > { %547 = vmatpush.bf16.msra.mxu0 %v2509_v7  ;;  %v299_v7 = vld [vmem:[#allocation2 + $0x98] sm:$0xff] }
  0x3d   : > { %548 = vmatpush.bf16.msra.mxu0 %v2516_v16  ;;  %v306_v16 = vld [vmem:[#allocation2 + $0xd0] sm:$0xff] }
  0x3e   : > { %v362_v22 = vpack.c.bf16 %v306_v16, %v299_v7 }
  0x40   : > { %694 = vmatpush.bf16.msrb.mxu1 %v362_v22 }
  0x41   : > { %549 = vmatpush.bf16.msra.mxu0 %v2527_v25  ;;  %v290_v25 = vld [vmem:[#allocation2 + $0x50] sm:$0xff] }
  0x42   : > { %2272 = vmatmul.msk.bf16.gmra.mxu3 %vm423_vm0, %v2580_v20  ;;  %2276 = vmatmul.msk.bf16.vlgmr.msrb.gmra.mxu0 %vm423_vm0, %v2545_v49  ;;  %v353_v27 = vpack.c.bf16 %v290_v25, %v283_v24 }
  0x43   : > { %2288 = vmatmul.msk.bf16.gmra.mxu2 %vm423_vm0, %v2580_v20 }
  0x44   : > { %2280 = vmatmul.msk.bf16.gmra.mxu1 %vm423_vm0, %v2580_v20  ;;  %599 = vmatpush.bf16.msrb.mxu3 %v353_v27 }
  0x45   : > { %550 = vmatpush.bf16.msra.mxu0 %v2534_v35  ;;  %v356_v35 = vpack.c.bf16 %v293_v33, %v286_v32  ;;  %695 = vmatpush.bf16.msrb.mxu1 %v355_v40 }
  0x47   : > { %743 = vmatpush.bf16.msrb.mxu2 %v356_v35 }
  0x49   : > { %551 = vmatpush.bf16.msra.mxu0 %v2542_v47  ;;  %v2604_v47 = vld [vmem:[%s2539_s28 + $0x30] sm:$0xff] }
  0x4d   : > { %643 = vmatpush.bf16.msrb.mxu0 %v382_v26 }
  0x51   : > { %644 = vmatpush.bf16.msrb.mxu0 %v375_v30 }
  0x52   : > { %2273 = vmatmul.msk.bf16.gmra.mxu3 %vm423_vm0, %v2593_v31  ;;  %2277 = vmatmul.msk.bf16.gmra.mxu0 %vm423_vm0, %v2563_v9 }
  0x53   : > { %2289 = vmatmul.msk.bf16.gmra.mxu2 %vm423_vm0, %v2593_v31 }
  0x54   : > { %2281 = vmatmul.msk.bf16.gmra.mxu1 %vm423_vm0, %v2593_v31 }
  0x55   : > { %645 = vmatpush.bf16.msrb.mxu0 %v368_v39 }
  0x59   : > { %646 = vmatpush.bf16.msrb.mxu0 %v361_v43 }
  0x5d   : > { %647 = vmatpush.bf16.msrb.mxu0 %v354_v46 }
  0x62   : > { %2274 = vmatmul.msk.bf16.gmra.mxu3 %vm423_vm0, %v2604_v47  ;;  %2284 = vmatmul.msk.bf16.vlgmr.msra.gmra.mxu0 %vm423_vm0, %v2545_v49 }
  0x63   : > { %2290 = vmatmul.msk.bf16.gmra.mxu2 %vm423_vm0, %v2604_v47 }
  0x64   : > { %2282 = vmatmul.msk.bf16.gmra.mxu1 %vm423_vm0, %v2604_v47 }
  0x72   : > { %2275 = vmatmul.msk.bf16.gmra.mxu3 %vm423_vm0, %v2615_v52  ;;  %2285 = vmatmul.msk.bf16.gmra.mxu0 %vm423_vm0, %v2563_v9 }
  0x73   : > { %2291 = vmatmul.msk.bf16.gmra.mxu2 %vm423_vm0, %v2615_v52 }
  0x74   : > { %2283 = vmatmul.msk.bf16.gmra.mxu1 %vm423_vm0, %v2615_v52 }
  0x82   : > { %2292 = vmatmul.msk.bf16.vlgmr.msrb.gmra.mxu3 %vm423_vm0, %v2545_v49  ;;  %2300 = vmatmul.msk.bf16.vlgmr.msrb.gmra.mxu0 %vm423_vm0, %v2545_v49 }
  0x83   : > { %2316 = vmatmul.msk.bf16.vlgmr.msrb.gmra.mxu2 %vm423_vm0, %v2545_v49 }
  0x84   : > { %2308 = vmatmul.msk.bf16.vlgmr.msrb.gmra.mxu1 %vm423_vm0, %v2545_v49 }
  0x92   : > { %2293 = vmatmul.msk.bf16.gmra.mxu3 %vm423_vm0, %v2563_v9  ;;  %2301 = vmatmul.msk.bf16.gmra.mxu0 %vm423_vm0, %v2563_v9 }
  0x93   : > { %2317 = vmatmul.msk.bf16.gmra.mxu2 %vm423_vm0, %v2563_v9 }
  0x94   : > { %2309 = vmatmul.msk.bf16.gmra.mxu1 %vm423_vm0, %v2563_v9 }
  0x9f   : > { %v2641_v53 = vpop.f32.mrf.mxu0 }
  0xa0   : > { %v1130_v46 = vmul.f32 %v2641_v53, %v2641_v53 }
  0xa1   : > { %v2643_v54 = vpop.f32.mrf.mxu1 }
  0xa2   : > { %3595 = vst [vmem:[#allocation5_spill] sm:$0xff] %v2643_v54  ;;  %2294 = vmatmul.msk.bf16.gmra.mxu3 %vm423_vm0, %v2548_v50  ;;  %2302 = vmatmul.msk.bf16.gmra.mxu0 %vm423_vm0, %v2548_v50 }
  0xa3   : > { %2318 = vmatmul.msk.bf16.gmra.mxu2 %vm423_vm0, %v2548_v50 }
  0xa4   : > { %2310 = vmatmul.msk.bf16.gmra.mxu1 %vm423_vm0, %v2548_v50 }
  0xa5   : > { %v2653_v49 = vpop.f32.mrf.mxu3 }
  0xa6   : > { %v2655_v55 = vpop.f32.mrf.mxu2 }
  0xa7   : > { %3596 = vst [vmem:[#allocation6_spill] sm:$0xff] %v2655_v55  ;;  %v2657_v56 = vpop.f32.mrf.mxu0 }
  0xa8   : > { %3597 = vst [vmem:[#allocation7_spill] sm:$0xff] %v2657_v56  ;;  %v1137_v48 = vmul.f32 %v2657_v56, %v2657_v56 }
  0xa9   : > { %v2659_v57 = vpop.f32.mrf.mxu1 }
  0xad   : > { %v2661_v58 = vpop.f32.mrf.mxu3 }
  0xae   : > { %v2663_v59 = vpop.f32.mrf.mxu2 }
  0xaf   : > { %v2665_v60 = vpop.f32.mrf.mxu0 }
  0xb1   : > { %v2667_v61 = vpop.f32.mrf.mxu1 }
  0xb2   : > { %3598 = vst [vmem:[#allocation8_spill] sm:$0xff] %v2667_v61  ;;  %2295 = vmatmul.msk.bf16.gmra.mxu3 %vm423_vm0, %v2566_v10  ;;  %2303 = vmatmul.msk.bf16.gmra.mxu0 %vm423_vm0, %v2566_v10 }
  0xb3   : > { %2319 = vmatmul.msk.bf16.gmra.mxu2 %vm423_vm0, %v2566_v10 }
  0xb4   : > { %2311 = vmatmul.msk.bf16.gmra.mxu1 %vm423_vm0, %v2566_v10 }
  0xb5   : > { %v2677_v50 = vpop.f32.mrf.mxu3 }
  0xb6   : > { %3599 = vst [vmem:[#allocation9_spill] sm:$0xff] %v2677_v50  ;;  %v2679_v62 = vpop.f32.mrf.mxu2 }
  0xb7   : > { %3600 = vst [vmem:[#allocation10_spill] sm:$0xff] %v2679_v62  ;;  %v2681_v63 = vpop.f32.mrf.mxu0 }
  0xb9   : > { %v2683_v0 = vpop.f32.mrf.mxu1 }
  0xba   : > { %3601 = vst [vmem:[#allocation11_spill] sm:$0xff] %v2683_v0 }
  0xbd   : > { %v2685_v1 = vpop.f32.mrf.mxu3 }
  0xbe   : > { %3602 = vst [vmem:[#allocation12_spill] sm:$0xff] %v2685_v1  ;;  %v2687_v2 = vpop.f32.mrf.mxu2 }
  0xbf   : > { %3603 = vst [vmem:[#allocation13_spill] sm:$0xff] %v2687_v2  ;;  %v2689_v3 = vpop.f32.mrf.mxu0 }
  0xc0   : > { %v995_v37 = vadd.f32 %v2689_v3, %v2641_v53  ;;  %v1131_v42 = vmul.f32 %v2689_v3, %v2689_v3 }
  0xc1   : > { %v2691_v4 = vpop.f32.mrf.mxu1 }
  0xc2   : > { %2296 = vmatmul.msk.bf16.gmra.mxu3 %vm423_vm0, %v2580_v20  ;;  %2304 = vmatmul.msk.bf16.gmra.mxu0 %vm423_vm0, %v2580_v20 }
  0xc3   : > { %2320 = vmatmul.msk.bf16.gmra.mxu2 %vm423_vm0, %v2580_v20 }
  0xc4   : > { %2312 = vmatmul.msk.bf16.gmra.mxu1 %vm423_vm0, %v2580_v20 }
  0xc5   : > { %v2701_v5 = vpop.f32.mrf.mxu3 }
  0xc6   : > { %v2703_v6 = vpop.f32.mrf.mxu2 }
  0xc7   : > { %v2705_v9 = vpop.f32.mrf.mxu0 }
  0xc8   : > { %3604 = vst [vmem:[#allocation14_spill] sm:$0xff] %v2705_v9  ;;  %v1138_v44 = vmul.f32 %v2705_v9, %v2705_v9 }
  0xc9   : > { %v2707_v10 = vpop.f32.mrf.mxu1 }
  0xca   : > { %3605 = vst [vmem:[#allocation15_spill] sm:$0xff] %v2707_v10 }
  0xcd   : > { %v2709_v8 = vpop.f32.mrf.mxu3 }
  0xce   : > { %3606 = vst [vmem:[#allocation16_spill] sm:$0xff] %v2709_v8  ;;  %v2711_v11 = vpop.f32.mrf.mxu2 }
  0xcf   : > { %3607 = vst [vmem:[#allocation17_spill] sm:$0xff] %v2711_v11  ;;  %v2713_v12 = vpop.f32.mrf.mxu0 }
  0xd1   : > { %v2715_v13 = vpop.f32.mrf.mxu1 }
  0xd2   : > { %3608 = vst [vmem:[#allocation18_spill] sm:$0xff] %v2715_v13  ;;  %2297 = vmatmul.msk.bf16.gmra.mxu3 %vm423_vm0, %v2593_v31  ;;  %2305 = vmatmul.msk.bf16.gmra.mxu0 %vm423_vm0, %v2593_v31 }
  0xd3   : > { %2321 = vmatmul.msk.bf16.gmra.mxu2 %vm423_vm0, %v2593_v31 }
  0xd4   : > { %2313 = vmatmul.msk.bf16.gmra.mxu1 %vm423_vm0, %v2593_v31 }
  0xd5   : > { %v2725_v14 = vpop.f32.mrf.mxu3 }
  0xd6   : > { %3609 = vst [vmem:[#allocation19_spill] sm:$0xff] %v2725_v14  ;;  %v2727_v15 = vpop.f32.mrf.mxu2 }
  0xd7   : > { %3610 = vst [vmem:[#allocation20_spill] sm:$0xff] %v2727_v15  ;;  %v2729_v17 = vpop.f32.mrf.mxu0 }
  0xd8   : > { %3611 = vst [vmem:[#allocation21_spill] sm:$0xff] %v2729_v17 }
  0xd9   : > { %v2731_v18 = vpop.f32.mrf.mxu1 }
  0xdd   : > { %v2733_v19 = vpop.f32.mrf.mxu3 }
  0xde   : > { %v2735_v20 = vpop.f32.mrf.mxu2 }
  0xdf   : > { %v2737_v7 = vpop.f32.mrf.mxu0 }
  0xe0   : > { %3612 = vst [vmem:[#allocation22_spill] sm:$0xff] %v2737_v7  ;;  %v996_v38 = vadd.f32 %v995_v37, %v2737_v7 }
  0xe1   : > { %v2739_v16 = vpop.f32.mrf.mxu1 }
  0xe2   : > { %3613 = vst [vmem:[#allocation23_spill] sm:$0xff] %v2739_v16  ;;  %2298 = vmatmul.msk.bf16.gmra.mxu3 %vm423_vm0, %v2604_v47  ;;  %2306 = vmatmul.msk.bf16.gmra.mxu0 %vm423_vm0, %v2604_v47 }
  0xe3   : > { %2322 = vmatmul.msk.bf16.gmra.mxu2 %vm423_vm0, %v2604_v47 }
  0xe4   : > { %2314 = vmatmul.msk.bf16.gmra.mxu1 %vm423_vm0, %v2604_v47  ;;  %v1132_v47 = vmul.f32 %v2737_v7, %v2737_v7 }
  0xe5   : > { %v2750_v21 = vpop.f32.mrf.mxu3 }
  0xe6   : > { %3614 = vst [vmem:[#allocation24_spill] sm:$0xff] %v2750_v21  ;;  %v2757_v22 = vpop.f32.mrf.mxu2 }
  0xe7   : > { %3615 = vst [vmem:[#allocation25_spill] sm:$0xff] %v2757_v22  ;;  %v2759_v23 = vpop.f32.mrf.mxu0 }
  0xe8   : > { %3616 = vst [vmem:[#allocation26_spill] sm:$0xff] %v2759_v23  ;;  %v1139_v51 = vmul.f32 %v2759_v23, %v2759_v23 }
  0xe9   : > { %v537_v24 = vpop.f32.mrf.mxu1 }
  0xea   : > { %877 = vst [vmem:[%s2755_s6 + $0x2e0] sm:$0xff] %v537_v24 }
  0xed   : > { %v489_v25 = vpop.f32.mrf.mxu3 }
  0xee   : > { %876 = vst [vmem:[%s2755_s6 + $0x2d8] sm:$0xff] %v489_v25  ;;  %v585_v26 = vpop.f32.mrf.mxu2  ;;  %v1235_v25 = vadd.f32 %v1131_v42, %v1130_v46 }
  0xef   : > { %878 = vst [vmem:[%s2755_s6 + $0x2e8] sm:$0xff] %v585_v26  ;;  %v2764_v27 = vpop.f32.mrf.mxu0  ;;  %v1244_v26 = vadd.f32 %v1138_v44, %v1137_v48  ;;  %v1145_v48 = vmul.f32 %v2713_v12, %v2713_v12 }
  0xf1   : > { %v540_v28 = vpop.f32.mrf.mxu1 }
  0xf2   : > { %884 = vst [vmem:[%s2755_s6 + $0x318] sm:$0xff] %v540_v28  ;;  %2299 = vmatmul.msk.bf16.gmra.mxu3 %vm423_vm0, %v2615_v52  ;;  %2307 = vmatmul.msk.bf16.gmra.mxu0 %vm423_vm0, %v2615_v52  ;;  %v1236_v28 = vadd.f32 %v1235_v25, %v1132_v47 }
  0xf3   : > { %2323 = vmatmul.msk.bf16.gmra.mxu2 %vm423_vm0, %v2615_v52 }
  0xf4   : > { %2315 = vmatmul.msk.bf16.gmra.mxu1 %vm423_vm0, %v2615_v52 }
  0xf5   : > { %v492_v29 = vpop.f32.mrf.mxu3 }
  0xf6   : > { %883 = vst [vmem:[%s2755_s6 + $0x310] sm:$0xff] %v492_v29  ;;  %v588_v30 = vpop.f32.mrf.mxu2 }
  0xf7   : > { %885 = vst [vmem:[%s2755_s6 + $0x320] sm:$0xff] %v588_v30  ;;  %v2777_v31 = vpop.f32.mrf.mxu0  ;;  %v1245_v30 = vadd.f32 %v1244_v26, %v1139_v51 }
  0xf8   : > { %3617 = vst [vmem:[#allocation27_spill] sm:$0xff] %v2777_v31 }
  0xf9   : > { %v542_v32 = vpop.f32.mrf.mxu1 }
  0xfd   : > { %v494_v33 = vpop.f32.mrf.mxu3 }
  0xfe   : > { %v590_v34 = vpop.f32.mrf.mxu2 }
  0xff   : > { %v2779_v35 = vpop.f32.mrf.mxu0 }
 0x100   : > { %3618 = vst [vmem:[#allocation28_spill] sm:$0xff] %v2779_v35  ;;  %v1134_v37 = vmul.f32 %v2779_v35, %v2779_v35 }
 0x101   : > { %v2781_v36 = vpop.f32.mrf.mxu1 }
 0x102   : > { %3619 = vst [vmem:[#allocation29_spill] sm:$0xff] %v2781_v36  ;;  %v1135_v25 = vmul.f32 %v2781_v36, %v2781_v36 }
 0x105   : > { %v2786_v39 = vpop.f32.mrf.mxu3 }
 0x106   : > { %3620 = vst [vmem:[#allocation30_spill] sm:$0xff] %v2786_v39  ;;  %v745_v40 = vpop.f32.mrf.mxu2  ;;  %v997_v41 = vadd.f32 %v996_v38, %v2786_v39  ;;  %v1133_v24 = vmul.f32 %v2786_v39, %v2786_v39  ;;  %v1153_v39 = vmul.f32 %v2777_v31, %v2777_v31 }
 0x107   : > { %791 = vst.msk [vmem:[%s2755_s6 + $0x30] sm:$0xff] %vm790_vm1, %v745_v40  ;;  %v2793_v43 = vpop.f32.mrf.mxu0 }
 0x108   : > { %v998_v52 = vadd.f32 %v997_v41, %v2779_v35  ;;  %v1237_v38 = vadd.f32 %v1236_v28, %v1133_v24  ;;  %v1144_v24 = vmul.f32 %v2665_v60, %v2665_v60  ;;  %v1141_v28 = vmul.f32 %v2793_v43, %v2793_v43 }
 0x109   : > { %v2797_v45 = vpop.f32.mrf.mxu1 }
 0x10a   : > { %v999_v34 = vadd.f32 %v998_v52, %v2781_v36  ;;  %v1004_v52 = vadd.f32 %v2705_v9, %v2657_v56  ;;  %v1238_v26 = vadd.f32 %v1237_v38, %v1134_v37  ;;  %v1142_v35 = vmul.f32 %v2797_v45, %v2797_v45 }
 0x10c   : > { %v1239_v56 = vadd.f32 %v1238_v26, %v1135_v25 }
 0x10d   : > { %v2810_v29 = vpop.f32.mrf.mxu3 }
 0x10e   : > { %3621 = vst [vmem:[#allocation31_spill] sm:$0xff] %v2810_v29  ;;  %v747_v32 = vpop.f32.mrf.mxu2  ;;  %v896_v33 = vld [vmem:[%s2755_s6 + $0x30] sm:$0xff]  ;;  %v1140_v40 = vmul.f32 %v2810_v29, %v2810_v29 }
 0x10f   : > { %798 = vst.msk [vmem:[%s2755_s6 + $0x68] sm:$0xff] %vm790_vm1, %v747_v32  ;;  %v2820_v41 = vpop.f32.mrf.mxu0  ;;  %v1000_v42 = vsel %vm790_vm1, %v896_v33, 0.0  ;;  %v1136_v51 = vmul.f32 %v896_v33, %v896_v33  ;;  %v1005_v32 = vadd.f32 %v1004_v52, %v2759_v23  ;;  %v1013_v33 = vadd.f32 %v2713_v12, %v2665_v60 }
 0x110   : > { %v1001_v46 = vadd.f32 %v1000_v42, %v999_v34  ;;  %v1246_v47 = vadd.f32 %v1245_v30, %v1140_v40  ;;  %v1146_v30 = vmul.f32 %v2764_v27, %v2764_v27  ;;  %v1253_v40 = vadd.f32 %v1145_v48, %v1144_v24 }
 0x111   : > { %v2823_v44 = vpop.f32.mrf.mxu1  ;;  %v1006_v37 = vadd.f32 %v1005_v32, %v2810_v29  ;;  %v1014_v38 = vadd.f32 %v1013_v33, %v2764_v27  ;;  %v1152_v24 = vmul.f32 %v2729_v17, %v2729_v17 }
 0x112   : > { %1002 = vadd.xlane.f32.xlu0 %v1001_v46  ;;  %v1247_v34 = vadd.f32 %v1246_v47, %v1141_v28  ;;  %v1240_v46 = vsel %vm790_vm1, %v1136_v51, 0.0  ;;  %v1254_v23 = vadd.f32 %v1253_v40, %v1146_v30  ;;  %v1148_v51 = vmul.f32 %v2820_v41, %v2820_v41 }
 0x113   : > { %v1241_v26 = vadd.f32 %v1240_v46, %v1239_v56  ;;  %v1151_v40 = vmul.f32 %v2681_v63, %v2681_v63  ;;  %v1022_v56 = vadd.f32 %v2729_v17, %v2681_v63 }
 0x114   : > { %v1248_v28 = vadd.f32 %v1247_v34, %v1142_v35  ;;  %v1149_v35 = vmul.f32 %v2823_v44, %v2823_v44 }
 0x115   : > { %v2840_v42 = vpop.f32.mrf.mxu3  ;;  %v1262_v7 = vadd.f32 %v1152_v24, %v1151_v40 }
 0x116   : > { %v750_v9 = vpop.f32.mrf.mxu2  ;;  %v903_v36 = vld [vmem:[%s2755_s6 + $0x68] sm:$0xff]  ;;  %v1147_v52 = vmul.f32 %v2840_v42, %v2840_v42  ;;  %v1015_v33 = vadd.f32 %v1014_v38, %v2840_v42 }
 0x117   : > { %805 = vst.msk [vmem:[%s2755_s6 + $0xa0] sm:$0xff] %vm790_vm1, %v750_v9  ;;  %v2852_v47 = vpop.f32.mrf.mxu0  ;;  %v1143_v48 = vmul.f32 %v903_v36, %v903_v36  ;;  %v1007_v9 = vadd.f32 %v1006_v37, %v2793_v43 }
 0x118   : > { %v1255_v32 = vadd.f32 %v1254_v23, %v1147_v52  ;;  %v1009_v23 = vsel %vm790_vm1, %v903_v36, 0.0  ;;  %v1016_v46 = vadd.f32 %v1015_v33, %v2820_v41  ;;  %v1159_v52 = vmul.f32 %v2643_v54, %v2643_v54 }
 0x119   : > { %v2858_v25 = vpop.f32.mrf.mxu1  ;;  %v1249_v30 = vsel %vm790_vm1, %v1143_v48, 0.0  ;;  %v1008_v38 = vadd.f32 %v1007_v9, %v2797_v45  ;;  %v1023_v36 = vadd.f32 %v1022_v56, %v2777_v31  ;;  %v1031_v9 = vadd.f32 %v2643_v54, %v2653_v49 }
 0x11a   : > { %1242 = vadd.xlane.f32.xlu0 %v1241_v26  ;;  %v1250_v29 = vadd.f32 %v1249_v30, %v1248_v28  ;;  %v1256_v34 = vadd.f32 %v1255_v32, %v1148_v51  ;;  %v1263_v26 = vadd.f32 %v1262_v7, %v1153_v39  ;;  %v1158_v51 = vmul.f32 %v2653_v49, %v2653_v49 }
 0x11b   : > { %v1010_v32 = vadd.f32 %v1009_v23, %v1008_v38  ;;  %v1017_v7 = vadd.f32 %v1016_v46, %v2823_v44  ;;  %v1155_v38 = vmul.f32 %v2852_v47, %v2852_v47  ;;  %v1160_v54 = vmul.f32 %v2655_v55, %v2655_v55 }
 0x11c   : > { %1251 = vadd.xlane.f32.xlu1 %v1250_v29  ;;  %v1257_v17 = vadd.f32 %v1256_v34, %v1149_v35  ;;  %v1032_v46 = vadd.f32 %v1031_v9, %v2655_v55  ;;  %v1040_v9 = vadd.f32 %v2659_v57, %v2661_v58 }
 0x11d   : > { %v2873_v37 = vpop.f32.mrf.mxu3 }
 0x11e   : > { %v752_v48 = vpop.f32.mrf.mxu2  ;;  %v910_v24 = vld [vmem:[%s2755_s6 + $0xa0] sm:$0xff]  ;;  %v1154_v29 = vmul.f32 %v2873_v37, %v2873_v37  ;;  %v1024_v56 = vadd.f32 %v1023_v36, %v2873_v37  ;;  %v1156_v36 = vmul.f32 %v2858_v25, %v2858_v25 }
 0x11f   : > { %812 = vst.msk [vmem:[%s2755_s6 + $0xd8] sm:$0xff] %vm790_vm1, %v752_v48  ;;  %v2886_v28 = vpop.f32.mrf.mxu0  ;;  %v1150_v33 = vmul.f32 %v910_v24, %v910_v24  ;;  %v1018_v30 = vsel %vm790_vm1, %v910_v24, 0.0  ;;  %v1271_v24 = vadd.f32 %v1159_v52, %v1158_v51 }
 0x120   : > { %3622 = vst [vmem:[#allocation32_spill] sm:$0xff] %v2886_v28  ;;  %v1264_v39 = vadd.f32 %v1263_v26, %v1154_v29  ;;  %v1019_v23 = vadd.f32 %v1018_v30, %v1017_v7  ;;  %v1025_v34 = vadd.f32 %v1024_v56, %v2852_v47 }
 0x121   : > { %v2891_v40 = vpop.f32.mrf.mxu1  ;;  %v1258_v48 = vsel %vm790_vm1, %v1150_v33, 0.0  ;;  %v1272_v51 = vadd.f32 %v1271_v24, %v1160_v54 }
 0x122   : > { %3623 = vst [vmem:[#allocation33_spill] sm:$0xff] %v2891_v40  ;;  %1011 = vadd.xlane.f32.xlu0 %v1010_v32  ;;  %v1259_v31 = vadd.f32 %v1258_v48, %v1257_v17  ;;  %v1265_v35 = vadd.f32 %v1264_v39, %v1155_v38  ;;  %v1026_v56 = vadd.f32 %v1025_v34, %v2858_v25 }
 0x123   : > { %v1162_v48 = vmul.f32 %v2886_v28, %v2886_v28  ;;  %v1163_v34 = vmul.f32 %v2891_v40, %v2891_v40 }
 0x124   : > { %1260 = vadd.xlane.f32.xlu2 %v1259_v31  ;;  %1020 = vadd.xlane.f32.xlu1 %v1019_v23  ;;  %v1266_v39 = vadd.f32 %v1265_v35, %v1156_v36  ;;  %v1166_v35 = vmul.f32 %v2659_v57, %v2659_v57  ;;  %v1041_v36 = vadd.f32 %v1040_v9, %v2663_v59 }
 0x125   : > { %v2902_v29 = vpop.f32.mrf.mxu3 }
 0x126   : > { %3624 = vst [vmem:[#allocation34_spill] sm:$0xff] %v2902_v29  ;;  %v755_v26 = vpop.f32.mrf.mxu2  ;;  %v917_v17 = vld [vmem:[%s2755_s6 + $0xd8] sm:$0xff]  ;;  %v1033_v32 = vadd.f32 %v1032_v46, %v2902_v29  ;;  %v1161_v52 = vmul.f32 %v2902_v29, %v2902_v29 }
 0x127   : > { %819 = vst.msk [vmem:[%s2755_s6 + $0x110] sm:$0xff] %vm790_vm1, %v755_v26  ;;  %v2912_v31 = vpop.f32.mrf.mxu0  ;;  %v1157_v33 = vmul.f32 %v917_v17, %v917_v17  ;;  %v1027_v30 = vsel %vm790_vm1, %v917_v17, 0.0  ;;  %v1165_v26 = vmul.f32 %v2661_v58, %v2661_v58 }
 0x128   : > { %v1273_v54 = vadd.f32 %v1272_v51, %v1161_v52  ;;  %v1028_v24 = vadd.f32 %v1027_v30, %v1026_v56  ;;  %v1034_v46 = vadd.f32 %v1033_v32, %v2886_v28 }
 0x129   : > { %v2917_v7 = vpop.f32.mrf.mxu1  ;;  %v1267_v23 = vsel %vm790_vm1, %v1157_v33, 0.0  ;;  %v1280_v9 = vadd.f32 %v1166_v35, %v1165_v26  ;;  %v1172_v35 = vmul.f32 %v2677_v50, %v2677_v50 }
 0x12a   : > { %v1268_v38 = vadd.f32 %v1267_v23, %v1266_v39  ;;  %v1274_v17 = vadd.f32 %v1273_v54, %v1162_v48  ;;  %v1035_v32 = vadd.f32 %v1034_v46, %v2891_v40  ;;  %v1167_v40 = vmul.f32 %v2663_v59, %v2663_v59 }
 0x12c   : > { %1269 = vadd.xlane.f32.xlu0 %v1268_v38  ;;  %1029 = vadd.xlane.f32.xlu1 %v1028_v24  ;;  %v1275_v54 = vadd.f32 %v1274_v17, %v1163_v34  ;;  %v1049_v24 = vadd.f32 %v2667_v61, %v2677_v50  ;;  %v1281_v34 = vadd.f32 %v1280_v9, %v1167_v40 }
 0x12d   : > { %v2931_v52 = vpop.f32.mrf.mxu3  ;;  %v1173_v17 = vmul.f32 %v2667_v61, %v2667_v61  ;;  %v1058_v50 = vadd.f32 %v2683_v0, %v2685_v1 }
 0x12e   : > { %v757_v51 = vpop.f32.mrf.mxu2  ;;  %v924_v33 = vld [vmem:[%s2755_s6 + $0x110] sm:$0xff]  ;;  %v1042_v30 = vadd.f32 %v1041_v36, %v2931_v52  ;;  %v1050_v26 = vadd.f32 %v1049_v24, %v2679_v62 }
 0x12f   : > { %826 = vst.msk [vmem:[%s2755_s6 + $0x148] sm:$0xff] %vm790_vm1, %v757_v51  ;;  %v2938_v39 = vpop.f32.mrf.mxu0  ;;  %v1036_v56 = vsel %vm790_vm1, %v924_v33, 0.0  ;;  %v1164_v23 = vmul.f32 %v924_v33, %v924_v33  ;;  %v1168_v33 = vmul.f32 %v2931_v52, %v2931_v52  ;;  %v1289_v61 = vadd.f32 %v1173_v17, %v1172_v35 }
 0x130   : > { %v1037_v48 = vadd.f32 %v1036_v56, %v1035_v32  ;;  %v1043_v51 = vadd.f32 %v1042_v30, %v2912_v31  ;;  %v1170_v35 = vmul.f32 %v2917_v7, %v2917_v7 }
 0x131   : > { %v2941_v38 = vpop.f32.mrf.mxu1  ;;  %v1276_v46 = vsel %vm790_vm1, %v1164_v23, 0.0 }
 0x132   : > { %3625 = vst [vmem:[#allocation35_spill] sm:$0xff] %v2941_v38  ;;  %1038 = vadd.xlane.f32.xlu2 %v1037_v48  ;;  %v1277_v36 = vadd.f32 %v1276_v46, %v1275_v54  ;;  %v1044_v23 = vadd.f32 %v1043_v51, %v2917_v7  ;;  %v1282_v48 = vadd.f32 %v1281_v34, %v1168_v33 }
 0x134   : > { %1278 = vadd.xlane.f32.xlu1 %v1277_v36  ;;  %v1169_v36 = vmul.f32 %v2912_v31, %v2912_v31 }
 0x135   : > { %v2956_v32 = vpop.f32.mrf.mxu3 }
 0x136   : > { %3626 = vst [vmem:[#allocation36_spill] sm:$0xff] %v2956_v32  ;;  %v760_v56 = vpop.f32.mrf.mxu2  ;;  %v931_v30 = vld [vmem:[%s2755_s6 + $0x148] sm:$0xff]  ;;  %v1051_v54 = vadd.f32 %v1050_v26, %v2956_v32  ;;  %v1283_v33 = vadd.f32 %v1282_v48, %v1169_v36  ;;  %v1174_v26 = vmul.f32 %v2679_v62, %v2679_v62  ;;  %v1179_v48 = vmul.f32 %v2685_v1, %v2685_v1 }
 0x137   : > { %833 = vst.msk [vmem:[%s2755_s6 + $0x180] sm:$0xff] %vm790_vm1, %v760_v56  ;;  %v2963_v40 = vpop.f32.mrf.mxu0  ;;  %v1045_v9 = vsel %vm790_vm1, %v931_v30, 0.0  ;;  %v1171_v51 = vmul.f32 %v931_v30, %v931_v30  ;;  %v1175_v56 = vmul.f32 %v2956_v32, %v2956_v32  ;;  %v1059_v30 = vadd.f32 %v1058_v50, %v2687_v2 }
 0x138   : > { %v1046_v46 = vadd.f32 %v1045_v9, %v1044_v23  ;;  %v1052_v34 = vadd.f32 %v1051_v54, %v2938_v39  ;;  %v1180_v23 = vmul.f32 %v2683_v0, %v2683_v0  ;;  %v1290_v17 = vadd.f32 %v1289_v61, %v1174_v26 }
 0x139   : > { %v2966_v24 = vpop.f32.mrf.mxu1  ;;  %v1285_v9 = vsel %vm790_vm1, %v1171_v51, 0.0  ;;  %v1284_v32 = vadd.f32 %v1283_v33, %v1170_v35  ;;  %v1067_v33 = vadd.f32 %v2691_v4, %v2701_v5  ;;  %v1181_v35 = vmul.f32 %v2687_v2, %v2687_v2 }
 0x13a   : > { %3627 = vst [vmem:[#allocation37_spill] sm:$0xff] %v2966_v24  ;;  %1047 = vadd.xlane.f32.xlu2 %v1046_v46  ;;  %v1176_v46 = vmul.f32 %v2938_v39, %v2938_v39  ;;  %v1053_v0 = vadd.f32 %v1052_v34, %v2941_v38  ;;  %v1291_v28 = vadd.f32 %v1290_v17, %v1175_v56 }
 0x13b   : > { %v1286_v51 = vadd.f32 %v1285_v9, %v1284_v32  ;;  %v1298_v55 = vadd.f32 %v1180_v23, %v1179_v48  ;;  %v1177_v34 = vmul.f32 %v2941_v38, %v2941_v38  ;;  %v1186_v32 = vmul.f32 %v2701_v5, %v2701_v5 }
 0x13c   : > { %v1292_v17 = vadd.f32 %v1291_v28, %v1176_v46  ;;  %v1187_v23 = vmul.f32 %v2691_v4, %v2691_v4 }
 0x13d   : > { %v2984_v54 = vpop.f32.mrf.mxu3  ;;  %v1299_v48 = vadd.f32 %v1298_v55, %v1181_v35 }
 0x13e   : > { %3628 = vst [vmem:[#allocation38_spill] sm:$0xff] %v2984_v54  ;;  %v762_v36 = vpop.f32.mrf.mxu2  ;;  %v938_v62 = vld [vmem:[%s2755_s6 + $0x180] sm:$0xff]  ;;  %v1060_v61 = vadd.f32 %v1059_v30, %v2984_v54  ;;  %v1293_v28 = vadd.f32 %v1292_v17, %v1177_v34  ;;  %v1307_v35 = vadd.f32 %v1187_v23, %v1186_v32  ;;  %v1183_v34 = vmul.f32 %v2963_v40, %v2963_v40 }
 0x13f   : > { %840 = vst.msk [vmem:[%s2755_s6 + $0x1b8] sm:$0xff] %vm790_vm1, %v762_v36  ;;  %v2994_v50 = vpop.f32.mrf.mxu0  ;;  %v1054_v26 = vsel %vm790_vm1, %v938_v62, 0.0  ;;  %v1178_v56 = vmul.f32 %v938_v62, %v938_v62  ;;  %v1068_v62 = vadd.f32 %v1067_v33, %v2703_v6 }
 0x140   : > { %v1055_v29 = vadd.f32 %v1054_v26, %v1053_v0  ;;  %v1061_v30 = vadd.f32 %v1060_v61, %v2963_v40  ;;  %v1182_v0 = vmul.f32 %v2984_v54, %v2984_v54 }
 0x141   : > { %v2997_v1 = vpop.f32.mrf.mxu1 }
 0x142   : > { %1287 = vadd.xlane.f32.xlu2 %v1286_v51  ;;  %1056 = vadd.xlane.f32.xlu0 %v1055_v29  ;;  %v1294_v29 = vsel %vm790_vm1, %v1178_v56, 0.0  ;;  %v1062_v61 = vadd.f32 %v1061_v30, %v2966_v24  ;;  %v1300_v26 = vadd.f32 %v1299_v48, %v1182_v0  ;;  %v1076_v56 = vadd.f32 %v2707_v10, %v2709_v8 }
 0x143   : > { %v1295_v2 = vadd.f32 %v1294_v29, %v1293_v28  ;;  %v1188_v30 = vmul.f32 %v2703_v6, %v2703_v6  ;;  %v1194_v48 = vmul.f32 %v2707_v10, %v2707_v10 }
 0x144   : > { %v1301_v0 = vadd.f32 %v1300_v26, %v1183_v34 }
 0x145   : > { %v3013_v9 = vpop.f32.mrf.mxu3  ;;  %v1308_v29 = vadd.f32 %v1307_v35, %v1188_v30 }
 0x146   : > { %v765_v36 = vpop.f32.mrf.mxu2  ;;  %v945_v46 = vld [vmem:[%s2755_s6 + $0x1b8] sm:$0xff]  ;;  %v1069_v51 = vadd.f32 %v1068_v62, %v3013_v9  ;;  %v1189_v23 = vmul.f32 %v3013_v9, %v3013_v9  ;;  %v1184_v62 = vmul.f32 %v2966_v24, %v2966_v24 }
 0x147   : > { %847 = vst.msk [vmem:[%s2755_s6 + $0x1f0] sm:$0xff] %vm790_vm1, %v765_v36  ;;  %v3021_v54 = vpop.f32.mrf.mxu0  ;;  %v1063_v55 = vsel %vm790_vm1, %v945_v46, 0.0  ;;  %v1185_v17 = vmul.f32 %v945_v46, %v945_v46  ;;  %v1077_v36 = vadd.f32 %v1076_v56, %v2711_v11  ;;  %v1190_v46 = vmul.f32 %v2994_v50, %v2994_v50 }
 0x148   : > { %3629 = vst [vmem:[#allocation39_spill] sm:$0xff] %v3021_v54  ;;  %v1064_v38 = vadd.f32 %v1063_v55, %v1062_v61  ;;  %v1070_v32 = vadd.f32 %v1069_v51, %v2994_v50  ;;  %v1302_v26 = vadd.f32 %v1301_v0, %v1184_v62  ;;  %v1309_v34 = vadd.f32 %v1308_v29, %v1189_v23 }
 0x149   : > { %v3024_v33 = vpop.f32.mrf.mxu1  ;;  %v1303_v28 = vsel %vm790_vm1, %v1185_v17, 0.0  ;;  %v1085_v0 = vadd.f32 %v2715_v13, %v2725_v14  ;;  %v1195_v62 = vmul.f32 %v2711_v11, %v2711_v11 }
 0x14a   : > { %3630 = vst [vmem:[#allocation40_spill] sm:$0xff] %v3024_v33  ;;  %1296 = vadd.xlane.f32.xlu0 %v1295_v2  ;;  %1065 = vadd.xlane.f32.xlu1 %v1064_v38  ;;  %v1193_v2 = vmul.f32 %v2709_v8, %v2709_v8  ;;  %v1071_v55 = vadd.f32 %v1070_v32, %v2997_v1 }
 0x14b   : > { %v1304_v17 = vadd.f32 %v1303_v28, %v1302_v26  ;;  %v1191_v32 = vmul.f32 %v2997_v1, %v2997_v1  ;;  %v1310_v29 = vadd.f32 %v1309_v34, %v1190_v46  ;;  %v1201_v28 = vmul.f32 %v2715_v13, %v2715_v13 }
 0x14c   : > { %v1316_v24 = vadd.f32 %v1194_v48, %v1193_v2  ;;  %v1200_v2 = vmul.f32 %v2725_v14, %v2725_v14  ;;  %v1086_v26 = vadd.f32 %v1085_v0, %v2727_v15 }
 0x14d   : > { %v3042_v38 = vpop.f32.mrf.mxu3  ;;  %v1311_v46 = vadd.f32 %v1310_v29, %v1191_v32  ;;  %v1197_v32 = vmul.f32 %v3021_v54, %v3021_v54 }
 0x14e   : > { %3631 = vst [vmem:[#allocation41_spill] sm:$0xff] %v3042_v38  ;;  %v767_v61 = vpop.f32.mrf.mxu2  ;;  %v952_v51 = vld [vmem:[%s2755_s6 + $0x1f0] sm:$0xff]  ;;  %v1078_v35 = vadd.f32 %v1077_v36, %v3042_v38  ;;  %v1196_v48 = vmul.f32 %v3042_v38, %v3042_v38 }
 0x14f   : > { %854 = vst.msk [vmem:[%s2755_s6 + $0x228] sm:$0xff] %vm790_vm1, %v767_v61  ;;  %v3052_v56 = vpop.f32.mrf.mxu0  ;;  %v1072_v30 = vsel %vm790_vm1, %v952_v51, 0.0  ;;  %v1192_v23 = vmul.f32 %v952_v51, %v952_v51  ;;  %v1317_v61 = vadd.f32 %v1316_v24, %v1195_v62  ;;  %v1325_v62 = vadd.f32 %v1201_v28, %v1200_v2 }
 0x150   : > { %3632 = vst [vmem:[#allocation42_spill] sm:$0xff] %v3052_v56  ;;  %v1073_v8 = vadd.f32 %v1072_v30, %v1071_v55  ;;  %v1079_v36 = vadd.f32 %v1078_v35, %v3021_v54 }
 0x151   : > { %v3055_v10 = vpop.f32.mrf.mxu1  ;;  %v1318_v30 = vadd.f32 %v1317_v61, %v1196_v48  ;;  %v1208_v61 = vmul.f32 %v2731_v18, %v2731_v18 }
 0x152   : > { %3633 = vst [vmem:[#allocation43_spill] sm:$0xff] %v3055_v10  ;;  %1305 = vadd.xlane.f32.xlu1 %v1304_v17  ;;  %1074 = vadd.xlane.f32.xlu2 %v1073_v8  ;;  %v1312_v8 = vsel %vm790_vm1, %v1192_v23, 0.0  ;;  %v1080_v35 = vadd.f32 %v1079_v36, %v3024_v33  ;;  %v1094_v23 = vadd.f32 %v2731_v18, %v2733_v19 }
 0x153   : > { %v1313_v13 = vadd.f32 %v1312_v8, %v1311_v46  ;;  %v1202_v36 = vmul.f32 %v2727_v15, %v2727_v15  ;;  %v1319_v48 = vadd.f32 %v1318_v30, %v1197_v32 }
 0x155   : > { %v3071_v51 = vpop.f32.mrf.mxu3  ;;  %v1326_v8 = vadd.f32 %v1325_v62, %v1202_v36 }
 0x156   : > { %3634 = vst [vmem:[#allocation44_spill] sm:$0xff] %v3071_v51  ;;  %v770_v55 = vpop.f32.mrf.mxu2  ;;  %v959_v34 = vld [vmem:[%s2755_s6 + $0x228] sm:$0xff]  ;;  %v1087_v17 = vadd.f32 %v1086_v26, %v3071_v51  ;;  %v1203_v28 = vmul.f32 %v3071_v51, %v3071_v51  ;;  %v1198_v26 = vmul.f32 %v3024_v33, %v3024_v33 }
 0x157   : > { %861 = vst.msk [vmem:[%s2755_s6 + $0x260] sm:$0xff] %vm790_vm1, %v770_v55  ;;  %v3079_v14 = vpop.f32.mrf.mxu0  ;;  %v1081_v24 = vsel %vm790_vm1, %v959_v34, 0.0  ;;  %v1199_v29 = vmul.f32 %v959_v34, %v959_v34  ;;  %v1095_v55 = vadd.f32 %v1094_v23, %v2735_v20  ;;  %v1204_v34 = vmul.f32 %v3052_v56, %v3052_v56 }
 0x158   : > { %v1082_v38 = vadd.f32 %v1081_v24, %v1080_v35  ;;  %v1088_v2 = vadd.f32 %v1087_v17, %v3052_v56  ;;  %v1320_v30 = vadd.f32 %v1319_v48, %v1198_v26  ;;  %v1327_v32 = vadd.f32 %v1326_v8, %v1203_v28 }
 0x159   : > { %v3082_v0 = vpop.f32.mrf.mxu1  ;;  %v1321_v46 = vsel %vm790_vm1, %v1199_v29, 0.0  ;;  %v1103_v48 = vadd.f32 %v2739_v16, %v2750_v21  ;;  %v1209_v26 = vmul.f32 %v2735_v20, %v2735_v20 }
 0x15a   : > { %3635 = vst [vmem:[#allocation45_spill] sm:$0xff] %v3082_v0  ;;  %1314 = vadd.xlane.f32.xlu2 %v1313_v13  ;;  %1083 = vadd.xlane.f32.xlu0 %v1082_v38  ;;  %v1207_v13 = vmul.f32 %v2733_v19, %v2733_v19  ;;  %v1089_v24 = vadd.f32 %v1088_v2, %v3055_v10 }
 0x15b   : > { %v1322_v29 = vadd.f32 %v1321_v46, %v1320_v30  ;;  %v1205_v2 = vmul.f32 %v3055_v10, %v3055_v10  ;;  %v1328_v8 = vadd.f32 %v1327_v32, %v1204_v34  ;;  %v1215_v46 = vmul.f32 %v2739_v16, %v2739_v16  ;;  %v981_v34 = vld [vmem:[%s2755_s6 + $0x2d8] sm:$0xff] }
 0x15c   : > { %v1334_v33 = vadd.f32 %v1208_v61, %v1207_v13  ;;  %v1214_v13 = vmul.f32 %v2750_v21, %v2750_v21  ;;  %v1104_v30 = vadd.f32 %v1103_v48, %v2757_v22 }
 0x15d   : > { %v3100_v38 = vpop.f32.mrf.mxu3 }
 0x15e   : > { %v772_v35 = vpop.f32.mrf.mxu2  ;;  %v966_v17 = vld [vmem:[%s2755_s6 + $0x260] sm:$0xff]  ;;  %v1096_v62 = vadd.f32 %v1095_v55, %v3100_v38  ;;  %v1210_v61 = vmul.f32 %v3100_v38, %v3100_v38  ;;  %v1343_v48 = vadd.f32 %v1215_v46, %v1214_v13 }
 0x15f   : > { %868 = vst.msk [vmem:[%s2755_s6 + $0x298] sm:$0xff] %vm790_vm1, %v772_v35  ;;  %v3110_v23 = vpop.f32.mrf.mxu0  ;;  %v1090_v36 = vsel %vm790_vm1, %v966_v17, 0.0  ;;  %v1206_v28 = vmul.f32 %v966_v17, %v966_v17  ;;  %v1335_v35 = vadd.f32 %v1334_v33, %v1209_v26 }
 0x160   : > { %3636 = vst [vmem:[#allocation46_spill] sm:$0xff] %v3110_v23  ;;  %v1091_v15 = vadd.f32 %v1090_v36, %v1089_v24  ;;  %v1097_v55 = vadd.f32 %v1096_v62, %v3079_v14  ;;  %v982_v24 = vld [vmem:[%s2755_s6 + $0x2e0] sm:$0xff]  ;;  %v1329_v62 = vadd.f32 %v1328_v8, %v1205_v2  ;;  %v1211_v2 = vmul.f32 %v3079_v14, %v3079_v14 }
 0x161   : > { %v3113_v51 = vpop.f32.mrf.mxu1  ;;  %v1336_v10 = vadd.f32 %v1335_v35, %v1210_v61  ;;  %v1112_v8 = vadd.f32 %v982_v24, %v981_v34  ;;  %v1216_v61 = vmul.f32 %v2757_v22, %v2757_v22 }
 0x162   : > { %3637 = vst [vmem:[#allocation47_spill] sm:$0xff] %v3113_v51  ;;  %1323 = vadd.xlane.f32.xlu0 %v1322_v29  ;;  %1092 = vadd.xlane.f32.xlu1 %v1091_v15  ;;  %v1330_v15 = vsel %vm790_vm1, %v1206_v28, 0.0  ;;  %v1098_v29 = vadd.f32 %v1097_v55, %v3082_v0 }
 0x163   : > { %v1331_v28 = vadd.f32 %v1330_v15, %v1329_v62  ;;  %v1337_v35 = vadd.f32 %v1336_v10, %v1211_v2  ;;  %v983_v15 = vld [vmem:[%s2755_s6 + $0x2e8] sm:$0xff]  ;;  %v1218_v10 = vmul.f32 %v3110_v23, %v3110_v23 }
 0x164   : > { %v1113_v62 = vadd.f32 %v1112_v8, %v983_v15 }
 0x165   : > { %v3129_v17 = vpop.f32.mrf.mxu3 }
 0x166   : > { %3638 = vst [vmem:[#allocation48_spill] sm:$0xff] %v3129_v17  ;;  %v775_v32 = vpop.f32.mrf.mxu2  ;;  %v973_v36 = vld [vmem:[%s2755_s6 + $0x298] sm:$0xff]  ;;  %v1105_v21 = vadd.f32 %v1104_v30, %v3129_v17  ;;  %v1217_v46 = vmul.f32 %v3129_v17, %v3129_v17  ;;  %v1344_v30 = vadd.f32 %v1343_v48, %v1216_v61 }
 0x167   : > { %875 = vst.msk [vmem:[%s2755_s6 + $0x2d0] sm:$0xff] %vm790_vm1, %v775_v32  ;;  %v3139_v16 = vpop.f32.mrf.mxu0  ;;  %v1099_v33 = vsel %vm790_vm1, %v973_v36, 0.0  ;;  %v1213_v55 = vmul.f32 %v973_v36, %v973_v36  ;;  %v1212_v32 = vmul.f32 %v3082_v0, %v3082_v0  ;;  %v1221_v36 = vmul.f32 %v981_v34, %v981_v34 }
 0x168   : > { %3639 = vst [vmem:[#allocation49_spill] sm:$0xff] %v3139_v16  ;;  %v1100_v56 = vadd.f32 %v1099_v33, %v1098_v29  ;;  %v1106_v13 = vadd.f32 %v1105_v21, %v3110_v23  ;;  %v1222_v29 = vmul.f32 %v982_v24, %v982_v24  ;;  %v988_v21 = vld [vmem:[%s2755_s6 + $0x310] sm:$0xff]  ;;  %v1345_v22 = vadd.f32 %v1344_v30, %v1217_v46 }
 0x169   : > { %v3142_v26 = vpop.f32.mrf.mxu1  ;;  %v1338_v17 = vadd.f32 %v1337_v35, %v1212_v32  ;;  %v1219_v35 = vmul.f32 %v3113_v51, %v3113_v51  ;;  %v1223_v46 = vmul.f32 %v983_v15, %v983_v15 }
 0x16a   : > { %3640 = vst [vmem:[#allocation50_spill] sm:$0xff] %v3142_v26  ;;  %1332 = vadd.xlane.f32.xlu1 %v1331_v28  ;;  %1101 = vadd.xlane.f32.xlu2 %v1100_v56  ;;  %v1339_v56 = vsel %vm790_vm1, %v1213_v55, 0.0  ;;  %v989_v28 = vld [vmem:[%s2755_s6 + $0x318] sm:$0xff]  ;;  %v1107_v61 = vadd.f32 %v1106_v13, %v3113_v51  ;;  %v1352_v11 = vadd.f32 %v1222_v29, %v1221_v36 }
 0x16b   : > { %v1340_v8 = vadd.f32 %v1339_v56, %v1338_v17  ;;  %v1121_v0 = vadd.f32 %v989_v28, %v988_v21  ;;  %v1346_v30 = vadd.f32 %v1345_v22, %v1218_v10  ;;  %v1228_v36 = vmul.f32 %v988_v21, %v988_v21 }
 0x16c   : > { %v1353_v56 = vadd.f32 %v1352_v11, %v1223_v46  ;;  %v1229_v29 = vmul.f32 %v989_v28, %v989_v28  ;;  %v1225_v28 = vmul.f32 %v3139_v16, %v3139_v16 }
 0x16d   : > { %v3154_v33 = vpop.f32.mrf.mxu3  ;;  %v1347_v15 = vadd.f32 %v1346_v30, %v1219_v35 }
 0x16e   : > { %3641 = vst [vmem:[#allocation51_spill] sm:$0xff] %v3154_v33  ;;  %v777_v2 = vpop.f32.mrf.mxu2  ;;  %v980_v48 = vld [vmem:[%s2755_s6 + $0x2d0] sm:$0xff]  ;;  %v1114_v54 = vadd.f32 %v1113_v62, %v3154_v33  ;;  %v1224_v17 = vmul.f32 %v3154_v33, %v3154_v33  ;;  %v990_v62 = vld [vmem:[%s2755_s6 + $0x320] sm:$0xff]  ;;  %v1361_v46 = vadd.f32 %v1229_v29, %v1228_v36 }
 0x16f   : > { %882 = vst.msk [vmem:[%s2755_s6 + $0x308] sm:$0xff] %vm790_vm1, %v777_v2  ;;  %v1108_v34 = vsel %vm790_vm1, %v980_v48, 0.0  ;;  %v3167_v24 = vpop.f32.mrf.mxu0  ;;  %v1220_v13 = vmul.f32 %v980_v48, %v980_v48  ;;  %v1122_v2 = vadd.f32 %v1121_v0, %v990_v62  ;;  %v1230_v30 = vmul.f32 %v990_v62, %v990_v62 }
 0x170   : > { %3642 = vst [vmem:[#allocation52_spill] sm:$0xff] %v3167_v24  ;;  %v1109_v55 = vadd.f32 %v1108_v34, %v1107_v61  ;;  %v1115_v32 = vadd.f32 %v1114_v54, %v3139_v16  ;;  %v1354_v10 = vadd.f32 %v1353_v56, %v1224_v17  ;;  %v1232_v29 = vmul.f32 %v3167_v24, %v3167_v24 }
 0x171   : > { %v3169_v23 = vpop.f32.mrf.mxu1  ;;  %v1348_v48 = vsel %vm790_vm1, %v1220_v13, 0.0 }
 0x172   : > { %3643 = vst [vmem:[#allocation53_spill] sm:$0xff] %v3169_v23  ;;  %1341 = vadd.xlane.f32.xlu2 %v1340_v8  ;;  %1110 = vadd.xlane.f32.xlu0 %v1109_v55  ;;  %v1116_v22 = vadd.f32 %v1115_v32, %v3142_v26  ;;  %v1349_v0 = vadd.f32 %v1348_v48, %v1347_v15 }
 0x173   : > { %v1355_v32 = vadd.f32 %v1354_v10, %v1225_v28  ;;  %v1362_v48 = vadd.f32 %v1361_v46, %v1230_v30  ;;  %v2470_v30 = vmov 0  }
 0x174   : > { %2371 = vset.pattern.permute.xlu0 %v2470_v30  ;;  %2372 = vset.pattern.permute.xlu1 %v2470_v30 }
 0x175   : > { %v3177_v61 = vpop.f32.mrf.mxu3  ;;  %2373 = vset.pattern.permute.xlu2 %v2470_v30 }
 0x176   : > { %v780_v34 = vpop.f32.mrf.mxu2  ;;  %v987_v8 = vld [vmem:[%s2755_s6 + $0x308] sm:$0xff]  ;;  %v1123_v54 = vadd.f32 %v1122_v2, %v3177_v61  ;;  %v1231_v56 = vmul.f32 %v3177_v61, %v3177_v61  ;;  %v1226_v2 = vmul.f32 %v3142_v26, %v3142_v26 }
 0x177   : > { %889 = vst.msk [vmem:[%s2755_s6 + $0x340] sm:$0xff] %vm790_vm1, %v780_v34  ;;  %v1117_v55 = vsel %vm790_vm1, %v987_v8, 0.0  ;;  %v686_v11 = vpop.f32.mrf.mxu0  ;;  %v1227_v35 = vmul.f32 %v987_v8, %v987_v8 }
 0x178   : > { %v1118_v21 = vadd.f32 %v1117_v55, %v1116_v22  ;;  %v1124_v17 = vadd.f32 %v1123_v54, %v3167_v24  ;;  %v1356_v22 = vadd.f32 %v1355_v32, %v1226_v2  ;;  %v1363_v8 = vadd.f32 %v1362_v48, %v1231_v56 }
 0x179   : > { %v734_v13 = vpop.f32.mrf.mxu1  ;;  %v1357_v15 = vsel %vm790_vm1, %v1227_v35, 0.0 }
 0x17a   : > { %1350 = vadd.xlane.f32.xlu0 %v1349_v0  ;;  %1119 = vadd.xlane.f32.xlu1 %v1118_v21  ;;  %v1125_v36 = vadd.f32 %v1124_v17, %v3169_v23  ;;  %v1358_v54 = vadd.f32 %v1357_v15, %v1356_v22  ;;  %v1233_v21 = vmul.f32 %v3169_v23, %v3169_v23 }
 0x17b   : > { %v1364_v28 = vadd.f32 %v1363_v8, %v1232_v29 }
 0x17d   : > { %v638_v34 = vpop.f32.mrf.mxu3  ;;  %v1365_v35 = vadd.f32 %v1364_v28, %v1233_v21 }
 0x17e   : > { %v994_v55 = vld [vmem:[%s2755_s6 + $0x340] sm:$0xff]  ;;  %v782_v62 = vpop.f32.mrf.mxu2 }
 0x17f   : > { %v1126_v10 = vsel %vm790_vm1, %v994_v55, 0.0  ;;  %v1234_v0 = vmul.f32 %v994_v55, %v994_v55 }
 0x180   : > { %v1127_v11 = vadd.f32 %v1126_v10, %v1125_v36 }
 0x181   : > { %v1366_v46 = vsel %vm790_vm1, %v1234_v0, 0.0 }
 0x182   : > { %1359 = vadd.xlane.f32.xlu1 %v1358_v54  ;;  %1128 = vadd.xlane.f32.xlu2 %v1127_v11  ;;  %v1367_v32 = vadd.f32 %v1366_v46, %v1365_v35 }
 0x185   : > { %v1003_v13 = vpop.xlane.xlu0 %1002 }
 0x186   : > { %v1370_v17 = vmul.f32 0.0012755102, %v1003_v13 }
 0x188   : > { %v1400_v2 = vmul.f32 %v1370_v17, %v1370_v17 }
 0x18a   : > { %1368 = vadd.xlane.f32.xlu2 %v1367_v32 }
 0x18d   : > { %v1243_v56 = vpop.xlane.xlu0 %1242 }
 0x18e   : > { %v1385_v48 = vmul.f32 0.0012755102, %v1243_v56 }
 0x18f   : > { %v1252_v34 = vpop.xlane.xlu1 %1251 }
 0x190   : > { %v1415_v15 = vsub.f32 %v1385_v48, %v1400_v2  ;;  %v1386_v8 = vmul.f32 0.0012755102, %v1252_v34 }
 0x192   : > { %v1430_v22 = vadd.f32 1e-05, %v1415_v15 }
 0x194   : > { %2374 = vrsqrt.f32 %v1430_v22  ;;  %vm1451_vm3 = vweird.f32 %v1430_v22 }
 0x195   : > { %v1012_v55 = vpop.xlane.xlu0 %1011 }
 0x196   : > { %v3202_v36 = vmul.f32 0.0012755102, %v1012_v55 }
 0x197   : > { %v1261_v62 = vpop.xlane.xlu2 %1260  ;;  %v1021_v29 = vpop.xlane.xlu1 %1020 }
 0x198   : > { %v1401_v10 = vmul.f32 %v3202_v36, %v3202_v36  ;;  %v3206_v54 = vmul.f32 0.0012755102, %v1021_v29  ;;  %v1387_v21 = vmul.f32 0.0012755102, %v1261_v62 }
 0x19a   : > { %v2375_v11 = vpop.eup %2374  ;;  %v1416_v0 = vsub.f32 %v1386_v8, %v1401_v10  ;;  %v1402_v28 = vmul.f32 %v3206_v54, %v3206_v54  ;;  %v1595_v8 = vld [vmem:[%s3214_s10] sm:$0xff] }
 0x19b   : > { %v1446_v13 = vmul.f32 %v2375_v11, %v1430_v22  ;;  %vm1452_vm2 = vweird.f32 %v2375_v11 }
 0x19c   : > { %v1431_v46 = vadd.f32 1e-05, %v1416_v0  ;;  %v1417_v35 = vsub.f32 %v1387_v21, %v1402_v28  ;;  %vm1453_vm4 = vmor %vm1451_vm3, %vm1452_vm2 }
 0x19d   : > { %v1447_v30 = vmul.f32 %v2375_v11, %v1446_v13 }
 0x19e   : > { %2376 = vrsqrt.f32 %v1431_v46  ;;  %v1432_v32 = vadd.f32 1e-05, %v1417_v35  ;;  %vm1461_vm6 = vweird.f32 %v1431_v46 }
 0x19f   : > { %v1448_v56 = vmul.f32 0.5, %v1447_v30  ;;  %v1270_v2 = vpop.xlane.xlu0 %1269  ;;  %v1030_v48 = vpop.xlane.xlu1 %1029 }
 0x1a0   : > { %2378 = vrsqrt.f32 %v1432_v32  ;;  %v3216_v34 = vmul.f32 0.0012755102, %v1030_v48  ;;  %v1388_v55 = vmul.f32 0.0012755102, %v1270_v2  ;;  %vm1471_vm9 = vweird.f32 %v1432_v32 }
 0x1a1   : > { %v1449_v15 = vsub.f32 1.5, %v1448_v56 }
 0x1a2   : > { %v1403_v62 = vmul.f32 %v3216_v34, %v3216_v34 }
 0x1a3   : > { %v1450_v29 = vmul.f32 %v2375_v11, %v1449_v15 }
 0x1a4   : > { %v2377_v10 = vpop.eup %2376  ;;  %v1418_v0 = vsub.f32 %v1388_v55, %v1403_v62  ;;  %v1625_v62 = vld [vmem:[%s3224_s13] sm:$0xff] }
 0x1a5   : > { %v1456_v21 = vmul.f32 %v2377_v10, %v1431_v46  ;;  %v1039_v28 = vpop.xlane.xlu2 %1038  ;;  %v1454_v13 = vsel %vm1453_vm4, %v2375_v11, %v1450_v29  ;;  %vm1462_vm5 = vweird.f32 %v2377_v10 }
 0x1a6   : > { %v2379_v35 = vpop.eup %2378  ;;  %v1433_v30 = vadd.f32 1e-05, %v1418_v0  ;;  %v3226_v56 = vmul.f32 0.0012755102, %v1039_v28  ;;  %v1610_v2 = vmul.f32 %v1595_v8, %v1454_v13  ;;  %v1596_v28 = vld [vmem:[%s3214_s10 + $0x8] sm:$0xff]  ;;  %vm1463_vm8 = vmor %vm1461_vm6, %vm1462_vm5 }
 0x1a7   : > { %v1457_v22 = vmul.f32 %v2377_v10, %v1456_v21  ;;  %v1466_v48 = vmul.f32 %v2379_v35, %v1432_v32  ;;  %v1279_v15 = vpop.xlane.xlu1 %1278  ;;  %vm1472_vm7 = vweird.f32 %v2379_v35 }
 0x1a8   : > { %2380 = vrsqrt.f32 %v1433_v30  ;;  %v1404_v55 = vmul.f32 %v3226_v56, %v3226_v56  ;;  %v1389_v11 = vmul.f32 0.0012755102, %v1279_v15  ;;  %1672 = vperm.xlu0 %2371, %v1610_v2   ;;  %v1640_v16 = vmul.f32 %v1610_v2, %v1370_v17  ;;  %v1597_v17 = vld [vmem:[%s3214_s10 + $0x10] sm:$0xff]  ;;  %vm1473_vm10 = vmor %vm1471_vm9, %vm1472_vm7 }
 0x1a9   : > { %v1458_v29 = vmul.f32 0.5, %v1457_v22  ;;  %v1467_v26 = vmul.f32 %v2379_v35, %v1466_v48  ;;  %vm1481_vm12 = vweird.f32 %v1433_v30 }
 0x1aa   : > { %v1419_v33 = vsub.f32 %v1389_v11, %v1404_v55  ;;  %v1655_v8 = vsub.f32 %v1625_v62, %v1640_v16 }
 0x1ab   : > { %v1459_v51 = vsub.f32 1.5, %v1458_v29  ;;  %v1468_v0 = vmul.f32 0.5, %v1467_v26 }
 0x1ac   : > { %v1434_v21 = vadd.f32 1e-05, %v1419_v33  ;;  %1852 = vperm.xlu1 %2372, %v1655_v8   ;;  %v1626_v33 = vld [vmem:[%s3224_s13 + $0x8] sm:$0xff] }
 0x1ad   : > { %v1460_v13 = vmul.f32 %v2377_v10, %v1459_v51  ;;  %v1469_v23 = vsub.f32 1.5, %v1468_v0  ;;  %v1048_v15 = vpop.xlane.xlu2 %1047 }
 0x1ae   : > { %v2381_v24 = vpop.eup %2380  ;;  %2382 = vrsqrt.f32 %v1434_v21  ;;  %v3235_v11 = vmul.f32 0.0012755102, %v1048_v15  ;;  %vm1491_vm15 = vweird.f32 %v1434_v21 }
 0x1af   : > { %v1464_v22 = vsel %vm1463_vm8, %v2377_v10, %v1460_v13  ;;  %v1470_v2 = vmul.f32 %v2379_v35, %v1469_v23  ;;  %v1476_v48 = vmul.f32 %v2381_v24, %v1433_v30  ;;  %vm1482_vm11 = vweird.f32 %v2381_v24  ;;  %v1598_v13 = vld [vmem:[%s3214_s10 + $0x18] sm:$0xff] }
 0x1b0   : > { %v1611_v55 = vmul.f32 %v1596_v28, %v1464_v22  ;;  %vm1483_vm13 = vmor %vm1481_vm12, %vm1482_vm11 }
 0x1b1   : > { %v1474_v16 = vsel %vm1473_vm10, %v2379_v35, %v1470_v2  ;;  %v1477_v26 = vmul.f32 %v2381_v24, %v1476_v48 }
 0x1b2   : > { %v1641_v51 = vmul.f32 %v1611_v55, %v3202_v36  ;;  %v1612_v46 = vmul.f32 %v1597_v17, %v1474_v16  ;;  %v1405_v36 = vmul.f32 %v3235_v11, %v3235_v11  ;;  %v1627_v17 = vld [vmem:[%s3224_s13 + $0x10] sm:$0xff] }
 0x1b3   : > { %v1478_v62 = vmul.f32 0.5, %v1477_v26 }
 0x1b4   : > { %v2383_v29 = vpop.eup %2382  ;;  %1682 = vperm.xlu2 %2373, %v1612_v46   ;;  %v1656_v10 = vsub.f32 %v1626_v33, %v1641_v51  ;;  %1677 = vperm.xlu1 %2372, %v1611_v55   ;;  %v1642_v35 = vmul.f32 %v1612_v46, %v3206_v54  ;;  %v1628_v46 = vld [vmem:[%s3224_s13 + $0x18] sm:$0xff] }
 0x1b5   : > { %v1479_v0 = vsub.f32 1.5, %v1478_v62  ;;  %v1486_v23 = vmul.f32 %v2383_v29, %v1434_v21  ;;  %v1288_v32 = vpop.xlane.xlu2 %1287  ;;  %v1057_v8 = vpop.xlane.xlu0 %1056  ;;  %vm1492_vm14 = vweird.f32 %v2383_v29 }
 0x1b6   : > { %v1390_v28 = vmul.f32 0.0012755102, %v1288_v32  ;;  %1857 = vperm.xlu0 %2371, %v1656_v10   ;;  %v3242_v33 = vmul.f32 0.0012755102, %v1057_v8  ;;  %v1657_v54 = vsub.f32 %v1627_v17, %v1642_v35  ;;  %vm1493_vm0 = vmor %vm1491_vm15, %vm1492_vm14 }
 0x1b7   : > { %v1480_v15 = vmul.f32 %v2381_v24, %v1479_v0  ;;  %v1487_v22 = vmul.f32 %v2383_v29, %v1486_v23 }
 0x1b8   : > { %v1420_v2 = vsub.f32 %v1390_v28, %v1405_v36  ;;  %v1406_v23 = vmul.f32 %v3242_v33, %v3242_v33 }
 0x1b9   : > { %v1484_v48 = vsel %vm1483_vm13, %v2381_v24, %v1480_v15  ;;  %v1488_v55 = vmul.f32 0.5, %v1487_v22  ;;  %v1599_v24 = vld [vmem:[%s3214_s10 + $0x20] sm:$0xff] }
 0x1ba   : > { %v1613_v16 = vmul.f32 %v1598_v13, %v1484_v48  ;;  %v1435_v26 = vadd.f32 1e-05, %v1420_v2  ;;  %v1629_v13 = vld [vmem:[%s3224_s13 + $0x20] sm:$0xff] }
 0x1bb   : > { %v1489_v51 = vsub.f32 1.5, %v1488_v55 }
 0x1bc   : > { %v1643_v62 = vmul.f32 %v1613_v16, %v3216_v34  ;;  %2384 = vrsqrt.f32 %v1435_v26  ;;  %1862 = vperm.xlu2 %2373, %v1657_v54   ;;  %vm1501_vm3 = vweird.f32 %v1435_v26 }
 0x1bd   : > { %v1490_v30 = vmul.f32 %v2383_v29, %v1489_v51  ;;  %v1297_v10 = vpop.xlane.xlu0 %1296  ;;  %v1066_v0 = vpop.xlane.xlu1 %1065 }
 0x1be   : > { %v1391_v32 = vmul.f32 0.0012755102, %v1297_v10  ;;  %v1658_v8 = vsub.f32 %v1628_v46, %v1643_v62  ;;  %v3250_v22 = vmul.f32 0.0012755102, %v1066_v0 }
 0x1bf   : > { %v1494_v35 = vsel %vm1493_vm0, %v2383_v29, %v1490_v30 }
 0x1c0   : > { %v1421_v36 = vsub.f32 %v1391_v32, %v1406_v23  ;;  %1867 = vperm.xlu1 %2372, %v1658_v8   ;;  %v1614_v28 = vmul.f32 %v1599_v24, %v1494_v35  ;;  %v1407_v29 = vmul.f32 %v3250_v22, %v3250_v22  ;;  %v1600_v23 = vld [vmem:[%s3214_s10 + $0x28] sm:$0xff] }
 0x1c2   : > { %v2385_v34 = vpop.eup %2384  ;;  %v1436_v15 = vadd.f32 1e-05, %v1421_v36  ;;  %v1644_v21 = vmul.f32 %v1614_v28, %v3226_v56 }
 0x1c3   : > { %v1496_v17 = vmul.f32 %v2385_v34, %v1435_v26  ;;  %vm1502_vm2 = vweird.f32 %v2385_v34 }
 0x1c4   : > { %2386 = vrsqrt.f32 %v1436_v15  ;;  %1687 = vperm.xlu2 %2373, %v1613_v16   ;;  %v1659_v2 = vsub.f32 %v1629_v13, %v1644_v21  ;;  %vm1503_vm4 = vmor %vm1501_vm3, %vm1502_vm2  ;;  %vm1511_vm6 = vweird.f32 %v1436_v15 }
 0x1c5   : > { %v1497_v48 = vmul.f32 %v2385_v34, %v1496_v17  ;;  %v1306_v55 = vpop.xlane.xlu1 %1305  ;;  %v1075_v54 = vpop.xlane.xlu2 %1074 }
 0x1c6   : > { %v1392_v51 = vmul.f32 0.0012755102, %v1306_v55  ;;  %1872 = vperm.xlu0 %2371, %v1659_v2   ;;  %v3255_v0 = vmul.f32 0.0012755102, %v1075_v54 }
 0x1c7   : > { %v1498_v46 = vmul.f32 0.5, %v1497_v48 }
 0x1c8   : > { %v1422_v62 = vsub.f32 %v1392_v51, %v1407_v29  ;;  %1692 = vperm.xlu1 %2372, %v1614_v28   ;;  %v1408_v28 = vmul.f32 %v3255_v0, %v3255_v0 }
 0x1c9   : > { %v1499_v30 = vsub.f32 1.5, %v1498_v46  ;;  %v1601_v46 = vld [vmem:[%s3214_s10 + $0x30] sm:$0xff] }
 0x1ca   : > { %v2387_v10 = vpop.eup %2386  ;;  %v1437_v56 = vadd.f32 1e-05, %v1422_v62  ;;  %v1630_v62 = vld [vmem:[%s3224_s13 + $0x28] sm:$0xff] }
 0x1cb   : > { %v1506_v16 = vmul.f32 %v2387_v10, %v1436_v15  ;;  %v1500_v24 = vmul.f32 %v2385_v34, %v1499_v30  ;;  %vm1512_vm5 = vweird.f32 %v2387_v10 }
 0x1cc   : > { %2388 = vrsqrt.f32 %v1437_v56  ;;  %vm1513_vm7 = vmor %vm1511_vm6, %vm1512_vm5  ;;  %vm1521_vm9 = vweird.f32 %v1437_v56 }
 0x1cd   : > { %v1507_v32 = vmul.f32 %v2387_v10, %v1506_v16  ;;  %v1315_v8 = vpop.xlane.xlu2 %1314  ;;  %v1084_v35 = vpop.xlane.xlu0 %1083  ;;  %v1504_v36 = vsel %vm1503_vm4, %v2385_v34, %v1500_v24 }
 0x1ce   : > { %v1393_v13 = vmul.f32 0.0012755102, %v1315_v8  ;;  %v1615_v21 = vmul.f32 %v1600_v23, %v1504_v36  ;;  %v3260_v54 = vmul.f32 0.0012755102, %v1084_v35 }
 0x1cf   : > { %v1508_v17 = vmul.f32 0.5, %v1507_v32 }
 0x1d0   : > { %v1423_v2 = vsub.f32 %v1393_v13, %v1408_v28  ;;  %1697 = vperm.xlu2 %2373, %v1615_v21   ;;  %v1645_v29 = vmul.f32 %v1615_v21, %v3235_v11  ;;  %v1409_v32 = vmul.f32 %v3260_v54, %v3260_v54 }
 0x1d1   : > { %v1509_v26 = vsub.f32 1.5, %v1508_v17 }
 0x1d2   : > { %v2389_v48 = vpop.eup %2388  ;;  %v1438_v55 = vadd.f32 1e-05, %v1423_v2  ;;  %v1660_v36 = vsub.f32 %v1630_v62, %v1645_v29 }
 0x1d3   : > { %v1516_v34 = vmul.f32 %v2389_v48, %v1437_v56  ;;  %v1510_v51 = vmul.f32 %v2387_v10, %v1509_v26  ;;  %vm1522_vm8 = vweird.f32 %v2389_v48 }
 0x1d4   : > { %2390 = vrsqrt.f32 %v1438_v55  ;;  %vm1523_vm10 = vmor %vm1521_vm9, %vm1522_vm8  ;;  %vm1531_vm12 = vweird.f32 %v1438_v55 }
 0x1d5   : > { %v1517_v30 = vmul.f32 %v2389_v48, %v1516_v34  ;;  %v1324_v16 = vpop.xlane.xlu0 %1323  ;;  %v1093_v24 = vpop.xlane.xlu1 %1092  ;;  %v1514_v23 = vsel %vm1513_vm7, %v2387_v10, %v1510_v51  ;;  %v1602_v34 = vld [vmem:[%s3214_s10 + $0x38] sm:$0xff]  ;;  %v1631_v51 = vld [vmem:[%s3224_s13 + $0x30] sm:$0xff] }
 0x1d6   : > { %v1394_v8 = vmul.f32 0.0012755102, %v1324_v16  ;;  %v1616_v35 = vmul.f32 %v1601_v46, %v1514_v23  ;;  %v3267_v17 = vmul.f32 0.0012755102, %v1093_v24 }
 0x1d7   : > { %v1518_v11 = vmul.f32 0.5, %v1517_v30 }
 0x1d8   : > { %v1424_v15 = vsub.f32 %v1394_v8, %v1409_v32  ;;  %1702 = vperm.xlu1 %2372, %v1616_v35   ;;  %1877 = vperm.xlu2 %2373, %v1660_v36   ;;  %v1646_v10 = vmul.f32 %v1616_v35, %v3242_v33  ;;  %v1410_v16 = vmul.f32 %v3267_v17, %v3267_v17 }
 0x1d9   : > { %v1519_v28 = vsub.f32 1.5, %v1518_v11 }
 0x1da   : > { %v2391_v13 = vpop.eup %2390  ;;  %v1439_v21 = vadd.f32 1e-05, %v1424_v15  ;;  %v1661_v32 = vsub.f32 %v1631_v51, %v1646_v10 }
 0x1db   : > { %v1526_v2 = vmul.f32 %v2391_v13, %v1438_v55  ;;  %v1520_v26 = vmul.f32 %v2389_v48, %v1519_v28  ;;  %vm1532_vm11 = vweird.f32 %v2391_v13  ;;  %v1632_v28 = vld [vmem:[%s3224_s13 + $0x38] sm:$0xff] }
 0x1dc   : > { %2392 = vrsqrt.f32 %v1439_v21  ;;  %vm1533_vm13 = vmor %vm1531_vm12, %vm1532_vm11  ;;  %vm1541_vm15 = vweird.f32 %v1439_v21 }
 0x1dd   : > { %v1527_v29 = vmul.f32 %v2391_v13, %v1526_v2  ;;  %v1333_v46 = vpop.xlane.xlu1 %1332  ;;  %v1102_v62 = vpop.xlane.xlu2 %1101  ;;  %v1524_v30 = vsel %vm1523_vm10, %v2389_v48, %v1520_v26  ;;  %v1603_v26 = vld [vmem:[%s3214_s10 + $0x40] sm:$0xff] }
 0x1de   : > { %v1395_v23 = vmul.f32 0.0012755102, %v1333_v46  ;;  %v1617_v24 = vmul.f32 %v1602_v34, %v1524_v30  ;;  %v3274_v11 = vmul.f32 0.0012755102, %v1102_v62 }
 0x1df   : > { %v1528_v33 = vmul.f32 0.5, %v1527_v29 }
 0x1e0   : > { %v1425_v56 = vsub.f32 %v1395_v23, %v1410_v16  ;;  %1707 = vperm.xlu0 %2371, %v1617_v24   ;;  %1882 = vperm.xlu1 %2372, %v1661_v32   ;;  %v1647_v48 = vmul.f32 %v1617_v24, %v3250_v22  ;;  %v1411_v46 = vmul.f32 %v3274_v11, %v3274_v11 }
 0x1e1   : > { %v1529_v8 = vsub.f32 1.5, %v1528_v33 }
 0x1e2   : > { %v2393_v35 = vpop.eup %2392  ;;  %v1440_v36 = vadd.f32 1e-05, %v1425_v56  ;;  %v1662_v62 = vsub.f32 %v1632_v28, %v1647_v48 }
 0x1e3   : > { %v1536_v15 = vmul.f32 %v2393_v35, %v1439_v21  ;;  %v1530_v2 = vmul.f32 %v2391_v13, %v1529_v8  ;;  %vm1542_vm14 = vweird.f32 %v2393_v35 }
 0x1e4   : > { %2394 = vrsqrt.f32 %v1440_v36  ;;  %vm1543_vm0 = vmor %vm1541_vm15, %vm1542_vm14  ;;  %vm1551_vm3 = vweird.f32 %v1440_v36 }
 0x1e5   : > { %v1537_v10 = vmul.f32 %v2393_v35, %v1536_v15  ;;  %v1342_v34 = vpop.xlane.xlu2 %1341  ;;  %v1111_v51 = vpop.xlane.xlu0 %1110  ;;  %v1534_v29 = vsel %vm1533_vm13, %v2391_v13, %v1530_v2  ;;  %v1604_v15 = vld [vmem:[%s3214_s10 + $0x48] sm:$0xff]  ;;  %v1633_v2 = vld [vmem:[%s3224_s13 + $0x40] sm:$0xff] }
 0x1e6   : > { %v1396_v30 = vmul.f32 0.0012755102, %v1342_v34  ;;  %v1618_v16 = vmul.f32 %v1603_v26, %v1534_v29  ;;  %v3281_v33 = vmul.f32 0.0012755102, %v1111_v51 }
 0x1e7   : > { %v1538_v22 = vmul.f32 0.5, %v1537_v10 }
 0x1e8   : > { %v1426_v55 = vsub.f32 %v1396_v30, %v1411_v46  ;;  %1887 = vperm.xlu0 %2371, %v1662_v62   ;;  %1712 = vperm.xlu2 %2373, %v1618_v16   ;;  %v1648_v13 = vmul.f32 %v1618_v16, %v3255_v0  ;;  %v1412_v34 = vmul.f32 %v3281_v33, %v3281_v33 }
 0x1e9   : > { %v1539_v23 = vsub.f32 1.5, %v1538_v22 }
 0x1ea   : > { %v2395_v24 = vpop.eup %2394  ;;  %v1441_v32 = vadd.f32 1e-05, %v1426_v55  ;;  %v1663_v46 = vsub.f32 %v1633_v2, %v1648_v13 }
 0x1eb   : > { %v1546_v56 = vmul.f32 %v2395_v24, %v1440_v36  ;;  %v1540_v8 = vmul.f32 %v2393_v35, %v1539_v23  ;;  %vm1552_vm2 = vweird.f32 %v2395_v24 }
 0x1ec   : > { %2396 = vrsqrt.f32 %v1441_v32  ;;  %vm1553_vm4 = vmor %vm1551_vm3, %vm1552_vm2  ;;  %vm1561_vm6 = vweird.f32 %v1441_v32 }
 0x1ed   : > { %v1547_v48 = vmul.f32 %v2395_v24, %v1546_v56  ;;  %v1351_v28 = vpop.xlane.xlu0 %1350  ;;  %v1120_v26 = vpop.xlane.xlu1 %1119  ;;  %v1544_v10 = vsel %vm1543_vm0, %v2393_v35, %v1540_v8  ;;  %v1605_v56 = vld [vmem:[%s3214_s10 + $0x50] sm:$0xff]  ;;  %v1634_v8 = vld [vmem:[%s3224_s13 + $0x48] sm:$0xff] }
 0x1ee   : > { %v1397_v29 = vmul.f32 0.0012755102, %v1351_v28  ;;  %v1619_v51 = vmul.f32 %v1604_v15, %v1544_v10  ;;  %v3288_v22 = vmul.f32 0.0012755102, %v1120_v26 }
 0x1ef   : > { %v1548_v0 = vmul.f32 0.5, %v1547_v48 }
 0x1f0   : > { %v1427_v21 = vsub.f32 %v1397_v29, %v1412_v34  ;;  %1717 = vperm.xlu1 %2372, %v1619_v51   ;;  %1892 = vperm.xlu2 %2373, %v1663_v46   ;;  %v1649_v35 = vmul.f32 %v1619_v51, %v3260_v54  ;;  %v1413_v28 = vmul.f32 %v3288_v22, %v3288_v22 }
 0x1f1   : > { %v1549_v30 = vsub.f32 1.5, %v1548_v0 }
 0x1f2   : > { %v2397_v62 = vpop.eup %2396  ;;  %v1442_v16 = vadd.f32 1e-05, %v1427_v21  ;;  %v1664_v34 = vsub.f32 %v1634_v8, %v1649_v35 }
 0x1f3   : > { %v1556_v55 = vmul.f32 %v2397_v62, %v1441_v32  ;;  %v1550_v23 = vmul.f32 %v2395_v24, %v1549_v30  ;;  %vm1562_vm5 = vweird.f32 %v2397_v62  ;;  %v1635_v30 = vld [vmem:[%s3224_s13 + $0x50] sm:$0xff] }
 0x1f4   : > { %2398 = vrsqrt.f32 %v1442_v16  ;;  %vm1563_vm7 = vmor %vm1561_vm6, %vm1562_vm5  ;;  %vm1571_vm9 = vweird.f32 %v1442_v16 }
 0x1f5   : > { %v1557_v13 = vmul.f32 %v2397_v62, %v1556_v55  ;;  %v1360_v15 = vpop.xlane.xlu1 %1359  ;;  %v1129_v2 = vpop.xlane.xlu2 %1128  ;;  %v1554_v48 = vsel %vm1553_vm4, %v2395_v24, %v1550_v23  ;;  %v1606_v23 = vld [vmem:[%s3214_s10 + $0x58] sm:$0xff] }
 0x1f6   : > { %v1398_v10 = vmul.f32 0.0012755102, %v1360_v15  ;;  %v1620_v26 = vmul.f32 %v1605_v56, %v1554_v48  ;;  %v3295_v0 = vmul.f32 0.0012755102, %v1129_v2 }
 0x1f7   : > { %v1558_v54 = vmul.f32 0.5, %v1557_v13 }
 0x1f8   : > { %v1428_v36 = vsub.f32 %v1398_v10, %v1413_v28  ;;  %1722 = vperm.xlu0 %2371, %v1620_v26   ;;  %1897 = vperm.xlu1 %2372, %v1664_v34   ;;  %v1650_v24 = vmul.f32 %v1620_v26, %v3267_v17  ;;  %v1414_v13 = vmul.f32 %v3295_v0, %v3295_v0 }
 0x1f9   : > { %v1559_v29 = vsub.f32 1.5, %v1558_v54 }
 0x1fa   : > { %v2399_v51 = vpop.eup %2398  ;;  %v1443_v46 = vadd.f32 1e-05, %v1428_v36  ;;  %v1665_v2 = vsub.f32 %v1635_v30, %v1650_v24  ;;  %v1607_v36 = vld [vmem:[%s3214_s10 + $0x60] sm:$0xff] }
 0x1fb   : > { %v1566_v21 = vmul.f32 %v2399_v51, %v1442_v16  ;;  %v1560_v55 = vmul.f32 %v2397_v62, %v1559_v29  ;;  %vm1572_vm8 = vweird.f32 %v2399_v51  ;;  %v1636_v29 = vld [vmem:[%s3224_s13 + $0x58] sm:$0xff] }
 0x1fc   : > { %2400 = vrsqrt.f32 %v1443_v46  ;;  %vm1573_vm10 = vmor %vm1571_vm9, %vm1572_vm8  ;;  %vm1581_vm12 = vweird.f32 %v1443_v46 }
 0x1fd   : > { %v1567_v35 = vmul.f32 %v2399_v51, %v1566_v21  ;;  %v1369_v56 = vpop.xlane.xlu2 %1368  ;;  %v1564_v8 = vsel %vm1563_vm7, %v2397_v62, %v1560_v55 }
 0x1fe   : > { %v1399_v15 = vmul.f32 0.0012755102, %v1369_v56  ;;  %v1621_v48 = vmul.f32 %v1606_v23, %v1564_v8  ;;  %v1637_v8 = vld [vmem:[%s3224_s13 + $0x60] sm:$0xff] }
 0x1ff   : > { %v1568_v28 = vmul.f32 0.5, %v1567_v35 }
 0x200   : > { %v1429_v17 = vsub.f32 %v1399_v15, %v1414_v13  ;;  %1902 = vperm.xlu0 %2371, %v1665_v2   ;;  %1727 = vperm.xlu2 %2373, %v1621_v48   ;;  %v1651_v34 = vmul.f32 %v1621_v48, %v3274_v11  ;;  %v1608_v15 = vld [vmem:[%s3214_s10 + $0x68] sm:$0xff] }
 0x201   : > { %v1569_v32 = vsub.f32 1.5, %v1568_v28 }
 0x202   : > { %v2401_v10 = vpop.eup %2400  ;;  %v1444_v26 = vadd.f32 1e-05, %v1429_v17  ;;  %v1666_v55 = vsub.f32 %v1636_v29, %v1651_v34 }
 0x203   : > { %v1576_v62 = vmul.f32 %v2401_v10, %v1443_v46  ;;  %v1570_v54 = vmul.f32 %v2399_v51, %v1569_v32  ;;  %vm1582_vm11 = vweird.f32 %v2401_v10 }
 0x204   : > { %2402 = vrsqrt.f32 %v1444_v26  ;;  %vm1583_vm13 = vmor %vm1581_vm12, %vm1582_vm11  ;;  %vm1591_vm15 = vweird.f32 %v1444_v26 }
 0x205   : > { %v1577_v24 = vmul.f32 %v2401_v10, %v1576_v62  ;;  %v1574_v21 = vsel %vm1573_vm10, %v2399_v51, %v1570_v54  ;;  %v1609_v62 = vld [vmem:[%s3214_s10 + $0x70] sm:$0xff]  ;;  %v1638_v54 = vld [vmem:[%s3224_s13 + $0x68] sm:$0xff] }
 0x206   : > { %v1622_v30 = vmul.f32 %v1607_v36, %v1574_v21 }
 0x207   : > { %v1578_v23 = vmul.f32 0.5, %v1577_v24 }
 0x208   : > { %1732 = vperm.xlu1 %2372, %v1622_v30   ;;  %1907 = vperm.xlu2 %2373, %v1666_v55   ;;  %v1652_v11 = vmul.f32 %v1622_v30, %v3281_v33 }
 0x209   : > { %v1579_v35 = vsub.f32 1.5, %v1578_v23 }
 0x20a   : > { %v2403_v56 = vpop.eup %2402  ;;  %v1667_v28 = vsub.f32 %v1637_v8, %v1652_v11 }
 0x20b   : > { %v1586_v16 = vmul.f32 %v2403_v56, %v1444_v26  ;;  %v1580_v13 = vmul.f32 %v2401_v10, %v1579_v35  ;;  %vm1592_vm14 = vweird.f32 %v2403_v56 }
 0x20c   : > { %vm1593_vm0 = vmor %vm1591_vm15, %vm1592_vm14 }
 0x20d   : > { %v1587_v2 = vmul.f32 %v2403_v56, %v1586_v16  ;;  %v1584_v51 = vsel %vm1583_vm13, %v2401_v10, %v1580_v13 }
 0x20e   : > { %v1683_v48 = vpop.permute.xlu2 %1682  ;;  %v1623_v17 = vmul.f32 %v1608_v15, %v1584_v51  ;;  %v1639_v15 = vld [vmem:[%s3224_s13 + $0x70] sm:$0xff]  ;;  %v3644_v51 = vld [vmem:[#allocation22_spill] sm:$0xff] }
 0x20f   : > { %v1588_v32 = vmul.f32 0.5, %v1587_v2  ;;  %v1759_v36 = vmul.f32 %v1683_v48, %v2665_v60  ;;  %v1760_v10 = vmul.f32 %v1683_v48, %v2713_v12  ;;  %v1761_v29 = vmul.f32 %v1683_v48, %v2764_v27  ;;  %v2404_v27 = vld [vmem:[%s2755_s6 + $0xa0] sm:$0xff] }
 0x210   : > { %1912 = vperm.xlu1 %2372, %v1667_v28   ;;  %1737 = vperm.xlu0 %2371, %v1623_v17   ;;  %v1653_v33 = vmul.f32 %v1623_v17, %v3288_v22  ;;  %v1762_v21 = vmul.f32 %v1683_v48, %v2840_v42  ;;  %v1763_v30 = vmul.f32 %v1683_v48, %v2820_v41 }
 0x211   : > { %v1589_v34 = vsub.f32 1.5, %v1588_v32  ;;  %v1764_v60 = vmul.f32 %v1683_v48, %v2823_v44  ;;  %v1765_v42 = vmul.f32 %v2404_v27, %v1683_v48  ;;  %v3651_v27 = vld [vmem:[#allocation31_spill] sm:$0xff] }
 0x212   : > { %v1668_v11 = vsub.f32 %v1638_v54, %v1653_v33 }
 0x213   : > { %v1590_v46 = vmul.f32 %v2403_v56, %v1589_v34  ;;  %v3646_v34 = vld [vmem:[#allocation28_spill] sm:$0xff] }
 0x215   : > { %v1594_v24 = vsel %vm1593_vm0, %v2403_v56, %v1590_v46 }
 0x216   : > { %v1863_v26 = vpop.permute.xlu2 %1862  ;;  %v1624_v22 = vmul.f32 %v1609_v62, %v1594_v24 }
 0x217   : > { %v1939_v55 = vadd.f32 %v1863_v26, %v1759_v36  ;;  %v1940_v23 = vadd.f32 %v1863_v26, %v1760_v10  ;;  %v1941_v35 = vadd.f32 %v1863_v26, %v1761_v29  ;;  %v1942_v12 = vadd.f32 %v1863_v26, %v1762_v21  ;;  %v2405_v10 = vld [vmem:[%s2755_s6 + $0x30] sm:$0xff] }
 0x218   : > { %1742 = vperm.xlu2 %2373, %v1624_v22   ;;  %v1943_v56 = vadd.f32 %v1863_v26, %v1763_v30  ;;  %1917 = vperm.xlu0 %2371, %v1668_v11   ;;  %v1944_v41 = vadd.f32 %v1863_v26, %v1764_v60  ;;  %v1654_v16 = vmul.f32 %v1624_v22, %v3295_v0  ;;  %v3645_v0 = vld [vmem:[#allocation30_spill] sm:$0xff] }
 0x219   : > { %2044 = vst [vmem:[%s2755_s6 + $0x70] sm:$0xff] %v1939_v55  ;;  %v1945_v8 = vadd.f32 %v1863_v26, %v1765_v42  ;;  %v3648_v55 = vld [vmem:[#allocation7_spill] sm:$0xff]  ;;  %v3650_v60 = vld [vmem:[#allocation26_spill] sm:$0xff] }
 0x21a   : > { %2045 = vst [vmem:[%s2755_s6 + $0x78] sm:$0xff] %v1940_v23  ;;  %v1673_v13 = vpop.permute.xlu0 %1672  ;;  %v1669_v28 = vsub.f32 %v1639_v15, %v1654_v16 }
 0x21b   : > { %2046 = vst [vmem:[%s2755_s6 + $0x80] sm:$0xff] %v1941_v35  ;;  %v1745_v44 = vmul.f32 %v1673_v13, %v2641_v53  ;;  %v1746_v2 = vmul.f32 %v1673_v13, %v2689_v3  ;;  %v1747_v48 = vmul.f32 %v1673_v13, %v3644_v51  ;;  %v1748_v17 = vmul.f32 %v1673_v13, %v3645_v0  ;;  %v3647_v3 = vld [vmem:[#allocation29_spill] sm:$0xff]  ;;  %v3649_v35 = vld [vmem:[#allocation14_spill] sm:$0xff] }
 0x21c   : > { %2047 = vst [vmem:[%s2755_s6 + $0x88] sm:$0xff] %v1942_v12  ;;  %v1749_v33 = vmul.f32 %v1673_v13, %v3646_v34  ;;  %v1750_v54 = vmul.f32 %v1673_v13, %v3647_v3  ;;  %v1751_v29 = vmul.f32 %v2405_v10, %v1673_v13  ;;  %v3653_v34 = vld [vmem:[#allocation27_spill] sm:$0xff] }
 0x21d   : > { %2048 = vst [vmem:[%s2755_s6 + $0x90] sm:$0xff] %v1943_v56 }
 0x21e   : > { %2049 = vst [vmem:[%s2755_s6 + $0x98] sm:$0xff] %v1944_v41  ;;  %v1853_v32 = vpop.permute.xlu1 %1852  ;;  %v1688_v30 = vpop.permute.xlu2 %1687 }
 0x21f   : > { %2050 = vst.msk [vmem:[%s2755_s6 + $0xa0] sm:$0xff] %vm790_vm1, %v1945_v8  ;;  %v1925_v46 = vadd.f32 %v1853_v32, %v1745_v44  ;;  %v1926_v62 = vadd.f32 %v1853_v32, %v1746_v2  ;;  %v1927_v53 = vadd.f32 %v1853_v32, %v1747_v48  ;;  %v1928_v36 = vadd.f32 %v1853_v32, %v1748_v17  ;;  %v2406_v8 = vld [vmem:[%s2755_s6 + $0x68] sm:$0xff] }
 0x220   : > { %1922 = vperm.xlu2 %2373, %v1669_v28   ;;  %v1929_v24 = vadd.f32 %v1853_v32, %v1749_v33  ;;  %v1930_v21 = vadd.f32 %v1853_v32, %v1750_v54  ;;  %v1931_v26 = vadd.f32 %v1853_v32, %v1751_v29  ;;  %v1768_v33 = vmul.f32 %v1688_v30, %v3653_v34  ;;  %v2407_v29 = vld [vmem:[%s2755_s6 + $0xd8] sm:$0xff] }
 0x221   : > { %2030 = vst [vmem:[%s2755_s6] sm:$0xff] %v1925_v46  ;;  %v1769_v46 = vmul.f32 %v1688_v30, %v2873_v37 }
 0x222   : > { %2031 = vst [vmem:[%s2755_s6 + $0x8] sm:$0xff] %v1926_v62 }
 0x223   : > { %2032 = vst [vmem:[%s2755_s6 + $0x10] sm:$0xff] %v1927_v53  ;;  %v1770_v53 = vmul.f32 %v1688_v30, %v2852_v47 }
 0x224   : > { %2033 = vst [vmem:[%s2755_s6 + $0x18] sm:$0xff] %v1928_v36 }
 0x225   : > { %2034 = vst [vmem:[%s2755_s6 + $0x20] sm:$0xff] %v1929_v24  ;;  %v1772_v24 = vmul.f32 %v2407_v29, %v1688_v30 }
 0x226   : > { %2035 = vst [vmem:[%s2755_s6 + $0x28] sm:$0xff] %v1930_v21  ;;  %v1678_v22 = vpop.permute.xlu1 %1677 }
 0x227   : > { %2036 = vst.msk [vmem:[%s2755_s6 + $0x30] sm:$0xff] %vm790_vm1, %v1931_v26  ;;  %v1752_v23 = vmul.f32 %v1678_v22, %v3648_v55  ;;  %v1753_v11 = vmul.f32 %v1678_v22, %v3649_v35  ;;  %v1754_v12 = vmul.f32 %v1678_v22, %v3650_v60  ;;  %v1755_v42 = vmul.f32 %v1678_v22, %v3651_v27  ;;  %v2408_v27 = vld [vmem:[%s2755_s6 + $0x148] sm:$0xff] }
 0x228   : > { %v1858_v56 = vpop.permute.xlu0 %1857  ;;  %v1756_v41 = vmul.f32 %v1678_v22, %v2793_v43  ;;  %v1757_v16 = vmul.f32 %v1678_v22, %v2797_v45  ;;  %v1758_v13 = vmul.f32 %v2406_v8, %v1678_v22  ;;  %v1766_v43 = vmul.f32 %v1688_v30, %v2681_v63  ;;  %v3652_v45 = vld [vmem:[#allocation21_spill] sm:$0xff] }
 0x229   : > { %v1932_v15 = vadd.f32 %v1858_v56, %v1752_v23  ;;  %v1933_v44 = vadd.f32 %v1858_v56, %v1753_v11  ;;  %v1934_v2 = vadd.f32 %v1858_v56, %v1754_v12  ;;  %v1935_v51 = vadd.f32 %v1858_v56, %v1755_v42 }
 0x22a   : > { %v1698_v48 = vpop.permute.xlu2 %1697  ;;  %v1936_v28 = vadd.f32 %v1858_v56, %v1756_v41  ;;  %v1937_v0 = vadd.f32 %v1858_v56, %v1757_v16  ;;  %v1938_v17 = vadd.f32 %v1858_v56, %v1758_v13  ;;  %v1767_v32 = vmul.f32 %v1688_v30, %v3652_v45  ;;  %v3654_v56 = vld [vmem:[#allocation5_spill] sm:$0xff]  ;;  %v3655_v16 = vld [vmem:[#allocation6_spill] sm:$0xff] }
 0x22b   : > { %2037 = vst [vmem:[%s2755_s6 + $0x38] sm:$0xff] %v1932_v15  ;;  %v1771_v63 = vmul.f32 %v1688_v30, %v2858_v25  ;;  %v1780_v26 = vmul.f32 %v1698_v48, %v2661_v58  ;;  %v1781_v47 = vmul.f32 %v1698_v48, %v2659_v57  ;;  %v1782_v25 = vmul.f32 %v1698_v48, %v2663_v59  ;;  %v3656_v15 = vld [vmem:[#allocation34_spill] sm:$0xff] }
 0x22c   : > { %2038 = vst [vmem:[%s2755_s6 + $0x40] sm:$0xff] %v1933_v44  ;;  %v1783_v30 = vmul.f32 %v1698_v48, %v2931_v52  ;;  %v1784_v58 = vmul.f32 %v1698_v48, %v2912_v31  ;;  %v1785_v57 = vmul.f32 %v1698_v48, %v2917_v7  ;;  %v1786_v52 = vmul.f32 %v2408_v27, %v1698_v48  ;;  %v3657_v44 = vld [vmem:[#allocation32_spill] sm:$0xff]  ;;  %v3658_v48 = vld [vmem:[#allocation33_spill] sm:$0xff] }
 0x22d   : > { %2039 = vst [vmem:[%s2755_s6 + $0x48] sm:$0xff] %v1934_v2 }
 0x22e   : > { %2040 = vst [vmem:[%s2755_s6 + $0x50] sm:$0xff] %v1935_v51 }
 0x22f   : > { %2041 = vst [vmem:[%s2755_s6 + $0x58] sm:$0xff] %v1936_v28 }
 0x230   : > { %2042 = vst [vmem:[%s2755_s6 + $0x60] sm:$0xff] %v1937_v0 }
 0x231   : > { %2043 = vst.msk [vmem:[%s2755_s6 + $0x68] sm:$0xff] %vm790_vm1, %v1938_v17  ;;  %v2409_v17 = vld [vmem:[%s2755_s6 + $0x110] sm:$0xff] }
 0x232   : > { %v1868_v62 = vpop.permute.xlu1 %1867  ;;  %v1878_v37 = vpop.permute.xlu2 %1877 }
 0x233   : > { %v1946_v3 = vadd.f32 %v1868_v62, %v1766_v43  ;;  %v1947_v54 = vadd.f32 %v1868_v62, %v1767_v32  ;;  %v1948_v36 = vadd.f32 %v1868_v62, %v1768_v33  ;;  %v1949_v10 = vadd.f32 %v1868_v62, %v1769_v46 }
 0x234   : > { %v1950_v21 = vadd.f32 %v1868_v62, %v1770_v53  ;;  %v1951_v22 = vadd.f32 %v1868_v62, %v1771_v63  ;;  %v1952_v55 = vadd.f32 %v1868_v62, %v1772_v24  ;;  %v1960_v23 = vadd.f32 %v1878_v37, %v1780_v26 }
 0x235   : > { %2051 = vst [vmem:[%s2755_s6 + $0xa8] sm:$0xff] %v1946_v3  ;;  %v1961_v35 = vadd.f32 %v1878_v37, %v1781_v47  ;;  %v1962_v11 = vadd.f32 %v1878_v37, %v1782_v25  ;;  %v1963_v59 = vadd.f32 %v1878_v37, %v1783_v30  ;;  %v1964_v42 = vadd.f32 %v1878_v37, %v1784_v58 }
 0x236   : > { %2052 = vst [vmem:[%s2755_s6 + $0xb0] sm:$0xff] %v1947_v54  ;;  %v1965_v41 = vadd.f32 %v1878_v37, %v1785_v57  ;;  %v1966_v8 = vadd.f32 %v1878_v37, %v1786_v52 }
 0x237   : > { %2053 = vst [vmem:[%s2755_s6 + $0xb8] sm:$0xff] %v1948_v36 }
 0x238   : > { %2054 = vst [vmem:[%s2755_s6 + $0xc0] sm:$0xff] %v1949_v10  ;;  %v1873_v13 = vpop.permute.xlu0 %1872 }
 0x239   : > { %2055 = vst [vmem:[%s2755_s6 + $0xc8] sm:$0xff] %v1950_v21 }
 0x23a   : > { %2056 = vst [vmem:[%s2755_s6 + $0xd0] sm:$0xff] %v1951_v22  ;;  %v1693_v60 = vpop.permute.xlu1 %1692  ;;  %v2410_v22 = vld [vmem:[%s2755_s6 + $0x1f0] sm:$0xff] }
 0x23b   : > { %2057 = vst.msk [vmem:[%s2755_s6 + $0xd8] sm:$0xff] %vm790_vm1, %v1952_v55  ;;  %v1773_v12 = vmul.f32 %v1693_v60, %v2653_v49  ;;  %v1774_v31 = vmul.f32 %v1693_v60, %v3654_v56  ;;  %v1775_v7 = vmul.f32 %v1693_v60, %v3655_v16  ;;  %v1776_v49 = vmul.f32 %v1693_v60, %v3656_v15  ;;  %v3665_v15 = vld [vmem:[#allocation11_spill] sm:$0xff] }
 0x23c   : > { %2065 = vst [vmem:[%s2755_s6 + $0x118] sm:$0xff] %v1960_v23  ;;  %v1777_v2 = vmul.f32 %v1693_v60, %v3657_v44  ;;  %v1778_v28 = vmul.f32 %v1693_v60, %v3658_v48  ;;  %v1779_v43 = vmul.f32 %v2409_v17, %v1693_v60  ;;  %v3660_v23 = vld [vmem:[#allocation8_spill] sm:$0xff]  ;;  %v3666_v44 = vld [vmem:[#allocation13_spill] sm:$0xff] }
 0x23d   : > { %2066 = vst [vmem:[%s2755_s6 + $0x120] sm:$0xff] %v1961_v35  ;;  %v1953_v51 = vadd.f32 %v1873_v13, %v1773_v12  ;;  %v1954_v0 = vadd.f32 %v1873_v13, %v1774_v31  ;;  %v1955_v45 = vadd.f32 %v1873_v13, %v1775_v7  ;;  %v1956_v32 = vadd.f32 %v1873_v13, %v1776_v49  ;;  %v3661_v35 = vld [vmem:[#allocation10_spill] sm:$0xff]  ;;  %v3663_v12 = vld [vmem:[#allocation35_spill] sm:$0xff] }
 0x23e   : > { %2067 = vst [vmem:[%s2755_s6 + $0x128] sm:$0xff] %v1962_v11  ;;  %v1957_v33 = vadd.f32 %v1873_v13, %v1777_v2  ;;  %v1958_v46 = vadd.f32 %v1873_v13, %v1778_v28  ;;  %v1959_v62 = vadd.f32 %v1873_v13, %v1779_v43  ;;  %v3662_v11 = vld [vmem:[#allocation36_spill] sm:$0xff]  ;;  %v2411_v31 = vld [vmem:[%s2755_s6 + $0x180] sm:$0xff] }
 0x23f   : > { %2068 = vst [vmem:[%s2755_s6 + $0x130] sm:$0xff] %v1963_v59 }
 0x240   : > { %2069 = vst [vmem:[%s2755_s6 + $0x138] sm:$0xff] %v1964_v42 }
 0x241   : > { %2070 = vst [vmem:[%s2755_s6 + $0x140] sm:$0xff] %v1965_v41 }
 0x242   : > { %2071 = vst.msk [vmem:[%s2755_s6 + $0x148] sm:$0xff] %vm790_vm1, %v1966_v8  ;;  %v1713_v34 = vpop.permute.xlu2 %1712 }
 0x243   : > { %2058 = vst [vmem:[%s2755_s6 + $0xe0] sm:$0xff] %v1953_v51  ;;  %v1801_v53 = vmul.f32 %v1713_v34, %v2701_v5  ;;  %v1802_v36 = vmul.f32 %v1713_v34, %v2691_v4  ;;  %v1803_v63 = vmul.f32 %v1713_v34, %v2703_v6  ;;  %v1804_v10 = vmul.f32 %v1713_v34, %v3013_v9  ;;  %v3659_v9 = vld [vmem:[#allocation9_spill] sm:$0xff]  ;;  %v3667_v51 = vld [vmem:[#allocation38_spill] sm:$0xff] }
 0x244   : > { %2059 = vst [vmem:[%s2755_s6 + $0xe8] sm:$0xff] %v1954_v0  ;;  %v1805_v29 = vmul.f32 %v1713_v34, %v2994_v50  ;;  %v1806_v21 = vmul.f32 %v1713_v34, %v2997_v1  ;;  %v1807_v47 = vmul.f32 %v2410_v22, %v1713_v34  ;;  %v3668_v34 = vld [vmem:[#allocation37_spill] sm:$0xff] }
 0x245   : > { %2060 = vst [vmem:[%s2755_s6 + $0xf0] sm:$0xff] %v1955_v45 }
 0x246   : > { %2061 = vst [vmem:[%s2755_s6 + $0xf8] sm:$0xff] %v1956_v32 }
 0x247   : > { %2062 = vst [vmem:[%s2755_s6 + $0x100] sm:$0xff] %v1957_v33 }
 0x248   : > { %2063 = vst [vmem:[%s2755_s6 + $0x108] sm:$0xff] %v1958_v46 }
 0x249   : > { %2064 = vst.msk [vmem:[%s2755_s6 + $0x110] sm:$0xff] %vm790_vm1, %v1959_v62  ;;  %v2412_v62 = vld [vmem:[%s2755_s6 + $0x1b8] sm:$0xff] }
 0x24a   : > { %v1703_v3 = vpop.permute.xlu1 %1702  ;;  %v1893_v54 = vpop.permute.xlu2 %1892 }
 0x24b   : > { %v1981_v24 = vadd.f32 %v1893_v54, %v1801_v53  ;;  %v1982_v37 = vadd.f32 %v1893_v54, %v1802_v36  ;;  %v1983_v26 = vadd.f32 %v1893_v54, %v1803_v63  ;;  %v1984_v5 = vadd.f32 %v1893_v54, %v1804_v10 }
 0x24c   : > { %v1985_v55 = vadd.f32 %v1893_v54, %v1805_v29  ;;  %v1986_v4 = vadd.f32 %v1893_v54, %v1806_v21  ;;  %v1987_v6 = vadd.f32 %v1893_v54, %v1807_v47  ;;  %v1787_v50 = vmul.f32 %v1703_v3, %v3659_v9 }
 0x24d   : > { %2086 = vst [vmem:[%s2755_s6 + $0x1c0] sm:$0xff] %v1981_v24  ;;  %v1788_v30 = vmul.f32 %v1703_v3, %v3660_v23  ;;  %v1789_v58 = vmul.f32 %v1703_v3, %v3661_v35  ;;  %v1790_v60 = vmul.f32 %v1703_v3, %v3662_v11  ;;  %v1791_v57 = vmul.f32 %v1703_v3, %v2938_v39  ;;  %v3664_v39 = vld [vmem:[#allocation12_spill] sm:$0xff] }
 0x24e   : > { %2087 = vst [vmem:[%s2755_s6 + $0x1c8] sm:$0xff] %v1982_v37  ;;  %v1792_v27 = vmul.f32 %v1703_v3, %v3663_v12  ;;  %v1793_v41 = vmul.f32 %v2411_v31, %v1703_v3  ;;  %v3675_v12 = vld [vmem:[#allocation40_spill] sm:$0xff] }
 0x24f   : > { %2088 = vst [vmem:[%s2755_s6 + $0x1d0] sm:$0xff] %v1983_v26  ;;  %v2414_v31 = vld [vmem:[%s2755_s6 + $0x228] sm:$0xff] }
 0x250   : > { %2089 = vst [vmem:[%s2755_s6 + $0x1d8] sm:$0xff] %v1984_v5  ;;  %v3669_v5 = vld [vmem:[#allocation45_spill] sm:$0xff] }
 0x251   : > { %2090 = vst [vmem:[%s2755_s6 + $0x1e0] sm:$0xff] %v1985_v55 }
 0x252   : > { %v1708_v25 = vpop.permute.xlu0 %1707  ;;  %v1883_v1 = vpop.permute.xlu1 %1882  ;;  %2091 = vst [vmem:[%s2755_s6 + $0x1e8] sm:$0xff] %v1986_v4  ;;  %v2413_v4 = vld [vmem:[%s2755_s6 + $0x298] sm:$0xff] }
 0x253   : > { %2092 = vst.msk [vmem:[%s2755_s6 + $0x1f0] sm:$0xff] %vm790_vm1, %v1987_v6  ;;  %v1967_v59 = vadd.f32 %v1883_v1, %v1787_v50  ;;  %v1968_v52 = vadd.f32 %v1883_v1, %v1788_v30  ;;  %v1969_v42 = vadd.f32 %v1883_v1, %v1789_v58  ;;  %v1970_v56 = vadd.f32 %v1883_v1, %v1790_v60  ;;  %v3672_v30 = vld [vmem:[#allocation17_spill] sm:$0xff]  ;;  %v3674_v60 = vld [vmem:[#allocation39_spill] sm:$0xff] }
 0x254   : > { %v1971_v16 = vadd.f32 %v1883_v1, %v1791_v57  ;;  %v1972_v7 = vadd.f32 %v1883_v1, %v1792_v27  ;;  %v1973_v8 = vadd.f32 %v1883_v1, %v1793_v41  ;;  %v1794_v13 = vmul.f32 %v1708_v25, %v3664_v39  ;;  %v3671_v1 = vld [vmem:[#allocation15_spill] sm:$0xff]  ;;  %v3673_v58 = vld [vmem:[#allocation41_spill] sm:$0xff] }
 0x255   : > { %2072 = vst [vmem:[%s2755_s6 + $0x150] sm:$0xff] %v1967_v59  ;;  %v1795_v49 = vmul.f32 %v1708_v25, %v3665_v15  ;;  %v1796_v2 = vmul.f32 %v1708_v25, %v3666_v44  ;;  %v1797_v48 = vmul.f32 %v1708_v25, %v3667_v51  ;;  %v1798_v17 = vmul.f32 %v1708_v25, %v2963_v40  ;;  %v3676_v39 = vld [vmem:[#allocation19_spill] sm:$0xff]  ;;  %v3677_v15 = vld [vmem:[#allocation18_spill] sm:$0xff]  ;;  %v3678_v44 = vld [vmem:[#allocation20_spill] sm:$0xff] }
 0x256   : > { %2073 = vst [vmem:[%s2755_s6 + $0x158] sm:$0xff] %v1968_v52  ;;  %v1799_v33 = vmul.f32 %v1708_v25, %v3668_v34  ;;  %v1800_v53 = vmul.f32 %v2412_v62, %v1708_v25  ;;  %v3679_v51 = vld [vmem:[#allocation44_spill] sm:$0xff] }
 0x257   : > { %2074 = vst [vmem:[%s2755_s6 + $0x160] sm:$0xff] %v1969_v42 }
 0x258   : > { %2075 = vst [vmem:[%s2755_s6 + $0x168] sm:$0xff] %v1970_v56 }
 0x259   : > { %2076 = vst [vmem:[%s2755_s6 + $0x170] sm:$0xff] %v1971_v16 }
 0x25a   : > { %v1888_v28 = vpop.permute.xlu0 %1887  ;;  %v1728_v0 = vpop.permute.xlu2 %1727  ;;  %2077 = vst [vmem:[%s2755_s6 + $0x178] sm:$0xff] %v1972_v7 }
 0x25b   : > { %v1974_v43 = vadd.f32 %v1888_v28, %v1794_v13  ;;  %v1975_v45 = vadd.f32 %v1888_v28, %v1795_v49  ;;  %v1976_v32 = vadd.f32 %v1888_v28, %v1796_v2  ;;  %2078 = vst.msk [vmem:[%s2755_s6 + $0x180] sm:$0xff] %vm790_vm1, %v1973_v8  ;;  %v1977_v46 = vadd.f32 %v1888_v28, %v1797_v48 }
 0x25c   : > { %v1978_v3 = vadd.f32 %v1888_v28, %v1798_v17  ;;  %v1979_v54 = vadd.f32 %v1888_v28, %v1799_v33  ;;  %v1980_v40 = vadd.f32 %v1888_v28, %v1800_v53  ;;  %v1822_v36 = vmul.f32 %v1728_v0, %v2733_v19  ;;  %v3680_v17 = vld [vmem:[#allocation42_spill] sm:$0xff]  ;;  %v3681_v33 = vld [vmem:[#allocation43_spill] sm:$0xff] }
 0x25d   : > { %2079 = vst [vmem:[%s2755_s6 + $0x188] sm:$0xff] %v1974_v43  ;;  %v1823_v29 = vmul.f32 %v1728_v0, %v2731_v18  ;;  %v1824_v24 = vmul.f32 %v1728_v0, %v2735_v20  ;;  %v1825_v21 = vmul.f32 %v1728_v0, %v3100_v38  ;;  %v1826_v37 = vmul.f32 %v1728_v0, %v3079_v14  ;;  %v3670_v38 = vld [vmem:[#allocation16_spill] sm:$0xff]  ;;  %v2415_v53 = vld [vmem:[%s2755_s6 + $0x260] sm:$0xff] }
 0x25e   : > { %2080 = vst [vmem:[%s2755_s6 + $0x190] sm:$0xff] %v1975_v45  ;;  %v1827_v19 = vmul.f32 %v1728_v0, %v3669_v5  ;;  %v1828_v6 = vmul.f32 %v2413_v4, %v1728_v0 }
 0x25f   : > { %2081 = vst [vmem:[%s2755_s6 + $0x198] sm:$0xff] %v1976_v32 }
 0x260   : > { %2082 = vst [vmem:[%s2755_s6 + $0x1a0] sm:$0xff] %v1977_v46 }
 0x261   : > { %2083 = vst [vmem:[%s2755_s6 + $0x1a8] sm:$0xff] %v1978_v3 }
 0x262   : > { %2084 = vst [vmem:[%s2755_s6 + $0x1b0] sm:$0xff] %v1979_v54  ;;  %v1718_v63 = vpop.permute.xlu1 %1717  ;;  %v1908_v10 = vpop.permute.xlu2 %1907 }
 0x263   : > { %2085 = vst.msk [vmem:[%s2755_s6 + $0x1b8] sm:$0xff] %vm790_vm1, %v1980_v40  ;;  %v2002_v26 = vadd.f32 %v1908_v10, %v1822_v36  ;;  %v2003_v22 = vadd.f32 %v1908_v10, %v1823_v29  ;;  %v2004_v47 = vadd.f32 %v1908_v10, %v1824_v24  ;;  %v2005_v55 = vadd.f32 %v1908_v10, %v1825_v21  ;;  %v2417_v29 = vld [vmem:[%s2755_s6 + $0x318] sm:$0xff]  ;;  %v2418_v21 = vld [vmem:[%s2755_s6 + $0x320] sm:$0xff] }
 0x264   : > { %v2006_v9 = vadd.f32 %v1908_v10, %v1826_v37  ;;  %v2007_v18 = vadd.f32 %v1908_v10, %v1827_v19  ;;  %v2008_v20 = vadd.f32 %v1908_v10, %v1828_v6  ;;  %v1808_v14 = vmul.f32 %v1718_v63, %v3670_v38  ;;  %v2419_v38 = vld [vmem:[%s2755_s6 + $0x340] sm:$0xff] }
 0x265   : > { %2107 = vst [vmem:[%s2755_s6 + $0x268] sm:$0xff] %v2002_v26  ;;  %v1809_v23 = vmul.f32 %v1718_v63, %v3671_v1  ;;  %v1810_v35 = vmul.f32 %v1718_v63, %v3672_v30  ;;  %v1811_v11 = vmul.f32 %v1718_v63, %v3673_v58  ;;  %v1812_v57 = vmul.f32 %v1718_v63, %v3674_v60  ;;  %v3684_v1 = vld [vmem:[#allocation24_spill] sm:$0xff]  ;;  %v3685_v30 = vld [vmem:[#allocation23_spill] sm:$0xff]  ;;  %v3686_v58 = vld [vmem:[#allocation25_spill] sm:$0xff] }
 0x266   : > { %2108 = vst [vmem:[%s2755_s6 + $0x270] sm:$0xff] %v2003_v22  ;;  %v1813_v27 = vmul.f32 %v1718_v63, %v3675_v12  ;;  %v1814_v41 = vmul.f32 %v2414_v31, %v1718_v63  ;;  %v2416_v63 = vld [vmem:[%s2755_s6 + $0x310] sm:$0xff]  ;;  %v3682_v22 = vld [vmem:[#allocation52_spill] sm:$0xff] }
 0x267   : > { %2109 = vst [vmem:[%s2755_s6 + $0x278] sm:$0xff] %v2004_v47  ;;  %v3687_v60 = vld [vmem:[#allocation48_spill] sm:$0xff] }
 0x268   : > { %2110 = vst [vmem:[%s2755_s6 + $0x280] sm:$0xff] %v2005_v55 }
 0x269   : > { %2111 = vst [vmem:[%s2755_s6 + $0x288] sm:$0xff] %v2006_v9  ;;  %v3683_v9 = vld [vmem:[#allocation53_spill] sm:$0xff] }
 0x26a   : > { %v1723_v50 = vpop.permute.xlu0 %1722  ;;  %v1898_v25 = vpop.permute.xlu1 %1897  ;;  %2112 = vst [vmem:[%s2755_s6 + $0x290] sm:$0xff] %v2007_v18 }
 0x26b   : > { %2113 = vst.msk [vmem:[%s2755_s6 + $0x298] sm:$0xff] %vm790_vm1, %v2008_v20  ;;  %v1988_v59 = vadd.f32 %v1898_v25, %v1808_v14  ;;  %v1989_v52 = vadd.f32 %v1898_v25, %v1809_v23  ;;  %v1990_v42 = vadd.f32 %v1898_v25, %v1810_v35  ;;  %v1991_v56 = vadd.f32 %v1898_v25, %v1811_v11 }
 0x26c   : > { %v1992_v16 = vadd.f32 %v1898_v25, %v1812_v57  ;;  %v1993_v7 = vadd.f32 %v1898_v25, %v1813_v27  ;;  %v1994_v8 = vadd.f32 %v1898_v25, %v1814_v41  ;;  %v1815_v13 = vmul.f32 %v1723_v50, %v3676_v39  ;;  %v3688_v27 = vld [vmem:[#allocation46_spill] sm:$0xff]  ;;  %v3689_v41 = vld [vmem:[#allocation47_spill] sm:$0xff] }
 0x26d   : > { %2093 = vst [vmem:[%s2755_s6 + $0x1f8] sm:$0xff] %v1988_v59  ;;  %v1816_v49 = vmul.f32 %v1723_v50, %v3677_v15  ;;  %v1817_v2 = vmul.f32 %v1723_v50, %v3678_v44  ;;  %v1818_v48 = vmul.f32 %v1723_v50, %v3679_v51  ;;  %v1819_v43 = vmul.f32 %v1723_v50, %v3680_v17  ;;  %v2421_v44 = vld [vmem:[%s2755_s6 + $0x2d8] sm:$0xff]  ;;  %v2422_v51 = vld [vmem:[%s2755_s6 + $0x2e0] sm:$0xff] }
 0x26e   : > { %2094 = vst [vmem:[%s2755_s6 + $0x200] sm:$0xff] %v1989_v52  ;;  %v1820_v46 = vmul.f32 %v1723_v50, %v3681_v33  ;;  %v1821_v3 = vmul.f32 %v2415_v53, %v1723_v50  ;;  %v3690_v17 = vld [vmem:[#allocation51_spill] sm:$0xff]  ;;  %v3692_v53 = vld [vmem:[#allocation50_spill] sm:$0xff] }
 0x26f   : > { %2095 = vst [vmem:[%s2755_s6 + $0x208] sm:$0xff] %v1990_v42 }
 0x270   : > { %2096 = vst [vmem:[%s2755_s6 + $0x210] sm:$0xff] %v1991_v56 }
 0x271   : > { %2097 = vst [vmem:[%s2755_s6 + $0x218] sm:$0xff] %v1992_v16 }
 0x272   : > { %v1903_v28 = vpop.permute.xlu0 %1902  ;;  %v1743_v0 = vpop.permute.xlu2 %1742  ;;  %2098 = vst [vmem:[%s2755_s6 + $0x220] sm:$0xff] %v1993_v7 }
 0x273   : > { %v1995_v45 = vadd.f32 %v1903_v28, %v1815_v13  ;;  %v1996_v32 = vadd.f32 %v1903_v28, %v1816_v49  ;;  %v1997_v34 = vadd.f32 %v1903_v28, %v1817_v2  ;;  %2099 = vst.msk [vmem:[%s2755_s6 + $0x228] sm:$0xff] %vm790_vm1, %v1994_v8  ;;  %v1998_v62 = vadd.f32 %v1903_v28, %v1818_v48  ;;  %v2420_v8 = vld [vmem:[%s2755_s6 + $0x2d0] sm:$0xff] }
 0x274   : > { %v1999_v54 = vadd.f32 %v1903_v28, %v1819_v43  ;;  %v2000_v40 = vadd.f32 %v1903_v28, %v1820_v46  ;;  %v2001_v36 = vadd.f32 %v1903_v28, %v1821_v3  ;;  %v1843_v10 = vmul.f32 %v2416_v63, %v1743_v0  ;;  %v2423_v28 = vld [vmem:[%s2755_s6 + $0x2e8] sm:$0xff] }
 0x275   : > { %2100 = vst [vmem:[%s2755_s6 + $0x230] sm:$0xff] %v1995_v45  ;;  %v1844_v24 = vmul.f32 %v2417_v29, %v1743_v0  ;;  %v1845_v37 = vmul.f32 %v2418_v21, %v1743_v0  ;;  %v1846_v5 = vmul.f32 %v1743_v0, %v3177_v61  ;;  %v1847_v47 = vmul.f32 %v1743_v0, %v3682_v22 }
 0x276   : > { %2101 = vst [vmem:[%s2755_s6 + $0x238] sm:$0xff] %v1996_v32  ;;  %v1848_v18 = vmul.f32 %v1743_v0, %v3683_v9  ;;  %v1849_v14 = vmul.f32 %v2419_v38, %v1743_v0  ;;  %v3691_v32 = vld [vmem:[#allocation49_spill] sm:$0xff] }
 0x277   : > { %2102 = vst [vmem:[%s2755_s6 + $0x240] sm:$0xff] %v1997_v34 }
 0x278   : > { %2103 = vst [vmem:[%s2755_s6 + $0x248] sm:$0xff] %v1998_v62 }
 0x279   : > { %2104 = vst [vmem:[%s2755_s6 + $0x250] sm:$0xff] %v1999_v54 }
 0x27a   : > { %2105 = vst [vmem:[%s2755_s6 + $0x258] sm:$0xff] %v2000_v40  ;;  %v1733_v26 = vpop.permute.xlu1 %1732  ;;  %v1923_v19 = vpop.permute.xlu2 %1922  ;;  %v2424_v40 = vld [vmem:[%s2755_s6 + $0x308] sm:$0xff] }
 0x27b   : > { %2106 = vst.msk [vmem:[%s2755_s6 + $0x260] sm:$0xff] %vm790_vm1, %v2001_v36  ;;  %v2023_v55 = vadd.f32 %v1923_v19, %v1843_v10  ;;  %v2024_v4 = vadd.f32 %v1923_v19, %v1844_v24  ;;  %v2025_v6 = vadd.f32 %v1923_v19, %v1845_v37  ;;  %v2026_v20 = vadd.f32 %v1923_v19, %v1846_v5 }
 0x27c   : > { %v2027_v50 = vadd.f32 %v1923_v19, %v1847_v47  ;;  %v2028_v61 = vadd.f32 %v1923_v19, %v1848_v18  ;;  %v2029_v25 = vadd.f32 %v1923_v19, %v1849_v14  ;;  %v1829_v23 = vmul.f32 %v1733_v26, %v3684_v1 }
 0x27d   : > { %2128 = vst [vmem:[%s2755_s6 + $0x310] sm:$0xff] %v2023_v55  ;;  %v1830_v35 = vmul.f32 %v1733_v26, %v3685_v30  ;;  %v1831_v11 = vmul.f32 %v1733_v26, %v3686_v58  ;;  %v1832_v57 = vmul.f32 %v1733_v26, %v3687_v60  ;;  %v1833_v52 = vmul.f32 %v1733_v26, %v3688_v27 }
 0x27e   : > { %2129 = vst [vmem:[%s2755_s6 + $0x318] sm:$0xff] %v2024_v4  ;;  %v1834_v16 = vmul.f32 %v1733_v26, %v3689_v41  ;;  %v1835_v39 = vmul.f32 %v2420_v8, %v1733_v26 }
 0x27f   : > { %2130 = vst [vmem:[%s2755_s6 + $0x320] sm:$0xff] %v2025_v6 }
 0x280   : > { %2131 = vst [vmem:[%s2755_s6 + $0x328] sm:$0xff] %v2026_v20 }
 0x281   : > { %2132 = vst [vmem:[%s2755_s6 + $0x330] sm:$0xff] %v2027_v50 }
 0x282   : > { %2133 = vst [vmem:[%s2755_s6 + $0x338] sm:$0xff] %v2028_v61  ;;  %v1913_v59 = vpop.permute.xlu1 %1912  ;;  %v1738_v12 = vpop.permute.xlu0 %1737 }
 0x283   : > { %2134 = vst.msk [vmem:[%s2755_s6 + $0x340] sm:$0xff] %vm790_vm1, %v2029_v25  ;;  %v2009_v42 = vadd.f32 %v1913_v59, %v1829_v23  ;;  %v2010_v56 = vadd.f32 %v1913_v59, %v1830_v35  ;;  %v2011_v31 = vadd.f32 %v1913_v59, %v1831_v11  ;;  %v2012_v7 = vadd.f32 %v1913_v59, %v1832_v57 }
 0x284   : > { %v2013_v13 = vadd.f32 %v1913_v59, %v1833_v52  ;;  %v2014_v15 = vadd.f32 %v1913_v59, %v1834_v16  ;;  %v2015_v49 = vadd.f32 %v1913_v59, %v1835_v39  ;;  %v1836_v2 = vmul.f32 %v2421_v44, %v1738_v12 }
 0x285   : > { %2114 = vst [vmem:[%s2755_s6 + $0x2a0] sm:$0xff] %v2009_v42  ;;  %v1837_v48 = vmul.f32 %v2422_v51, %v1738_v12  ;;  %v1838_v0 = vmul.f32 %v2423_v28, %v1738_v12  ;;  %v1839_v43 = vmul.f32 %v1738_v12, %v3690_v17  ;;  %v1840_v34 = vmul.f32 %v1738_v12, %v3691_v32 }
 0x286   : > { %2115 = vst [vmem:[%s2755_s6 + $0x2a8] sm:$0xff] %v2010_v56  ;;  %v1841_v3 = vmul.f32 %v1738_v12, %v3692_v53  ;;  %v1842_v36 = vmul.f32 %v2424_v40, %v1738_v12 }
 0x287   : > { %2116 = vst [vmem:[%s2755_s6 + $0x2b0] sm:$0xff] %v2011_v31 }
 0x288   : > { %2117 = vst [vmem:[%s2755_s6 + $0x2b8] sm:$0xff] %v2012_v7 }
 0x289   : > { %2118 = vst [vmem:[%s2755_s6 + $0x2c0] sm:$0xff] %v2013_v13 }
 0x28a   : > { %2119 = vst [vmem:[%s2755_s6 + $0x2c8] sm:$0xff] %v2014_v15  ;;  %v1918_v45 = vpop.permute.xlu0 %1917 }
 0x28b   : > { %2120 = vst.msk [vmem:[%s2755_s6 + $0x2d0] sm:$0xff] %vm790_vm1, %v2015_v49  ;;  %v2016_v33 = vadd.f32 %v1918_v45, %v1836_v2  ;;  %v2017_v46 = vadd.f32 %v1918_v45, %v1837_v48  ;;  %v2018_v62 = vadd.f32 %v1918_v45, %v1838_v0  ;;  %v2019_v54 = vadd.f32 %v1918_v45, %v1839_v43 }
 0x28c   : > { %v2020_v63 = vadd.f32 %v1918_v45, %v1840_v34  ;;  %v2021_v10 = vadd.f32 %v1918_v45, %v1841_v3  ;;  %v2022_v29 = vadd.f32 %v1918_v45, %v1842_v36 }
 0x28d   : > { %2121 = vst [vmem:[%s2755_s6 + $0x2d8] sm:$0xff] %v2016_v33 }
 0x28e   : > { %2122 = vst [vmem:[%s2755_s6 + $0x2e0] sm:$0xff] %v2017_v46 }
 0x28f   : > { %2123 = vst [vmem:[%s2755_s6 + $0x2e8] sm:$0xff] %v2018_v62 }
 0x290   : > { %2124 = vst [vmem:[%s2755_s6 + $0x2f0] sm:$0xff] %v2019_v54 }
 0x291   : > { %2125 = vst [vmem:[%s2755_s6 + $0x2f8] sm:$0xff] %v2020_v63 }
 0x292   : > { %2126 = vst [vmem:[%s2755_s6 + $0x300] sm:$0xff] %v2021_v10 }
 0x293   : > { %2127 = vst.msk [vmem:[%s2755_s6 + $0x308] sm:$0xff] %vm790_vm1, %v2022_v29 }
 0x294 PF: > { %s15_s15 = sadd.s32 1, %s2465_s15  }
 0x295   : > { %p12_p7 = scmp.ge.s32.totalorder %s15_s15, 6  }
 0x297   :  { %14 = sbr.rel (!%p12_p7) target bundleno = 1 (0x1), region = 77 }
 0x29c   :  { %2159 = vsyncpa [#allocation3], 1 }
 0x29d   :  { %2161 = vsyncpa [#allocation3 + $0x1], 1 }

</bundles_post_ra>
